<compile_context>
chip_gen: v7x
topology: tpu7x:2x2x1
jax: 0.10.0
libtpu: 0.0.40
codegen_flags: <defaults>
</compile_context>

<pallas_src>
import functools

import jax
import jax.numpy as jnp
import numpy as np
from jax import lax
from jax.experimental import pallas as pl
from jax.experimental.pallas import tpu as pltpu


def attn_residual_kernel(x_ref, wqkv_ref, bqkv_ref, wproj_ref, bproj_ref,
                         o_ref, qkv_scr, y_scr, *, num_heads, heads_per_group):
    _, N, C = x_ref.shape
    hd = C // num_heads
    stripe = heads_per_group * hd
    n_groups = num_heads // heads_per_group

    # Fused QKV projection on the MXU: (N, C) @ (C, 3C), bf16 in / f32 acc.
    # The attention scale is already folded into the q columns of the weight
    # and bias (done once in the wrapper), so there is no extra multiply here.
    x_bf = x_ref[0].astype(jnp.bfloat16)
    qkv = jnp.dot(x_bf, wqkv_ref[...], preferred_element_type=jnp.float32)
    qkv = qkv + bqkv_ref[...]
    # Stage qkv once as bf16 (the MXU operand dtype): one lane-dense store;
    # the f32 (N, 3C) value dies here.
    qkv_scr[...] = qkv.astype(jnp.bfloat16)

    # Per-head attention, processed in 128-lane head groups so each write into
    # the head-merge scratch is a single lane-dense (N, stripe) store.  All
    # offsets are static Python ints (no dynamic lane indexing).
    for g in range(n_groups):
        lo_g = g * stripe
        qg = qkv_scr[:, lo_g:lo_g + stripe]
        kg = qkv_scr[:, C + lo_g:C + lo_g + stripe]
        vg = qkv_scr[:, 2 * C + lo_g:2 * C + lo_g + stripe]
        outs = []
        for h in range(heads_per_group):           # static; 1-2 heads per stripe
            lo = h * hd
            qh = qg[:, lo:lo + hd]
            kh = kg[:, lo:lo + hd]
            vh = vg[:, lo:lo + hd]
            # s = qh @ kh^T via contraction dims (no explicit transpose op).
            s = lax.dot_general(qh, kh, (((1,), (1,)), ((), ())),
                                preferred_element_type=jnp.float32)   # (N, N)
            s = s - jnp.max(s, axis=-1, keepdims=True)
            p = jnp.exp(s)
            inv = pl.reciprocal(jnp.sum(p, axis=-1, keepdims=True), approx=True)
            p = (p * inv).astype(jnp.bfloat16)
            outs.append(
                jnp.dot(p, vh,
                        preferred_element_type=jnp.float32).astype(jnp.bfloat16))
        y_g = outs[0] if len(outs) == 1 else jnp.concatenate(outs, axis=-1)
        y_scr[:, lo_g:lo_g + stripe] = y_g          # lane-dense store

    # Output projection + bias + residual.  x stays resident in VMEM, so it is
    # re-read here instead of holding an f32 copy live across the head loop.
    y = jnp.dot(y_scr[...], wproj_ref[...],
                preferred_element_type=jnp.float32) + bproj_ref[...]
    o_ref[0] = (x_ref[0].astype(jnp.float32) + y).astype(o_ref.dtype)


def _heads_per_group(num_heads, head_dim):
    """Largest divisor of num_heads whose lane width (d*head_dim) fits in 128."""
    if head_dim >= 128:
        return 1
    return max(d for d in range(1, num_heads + 1)
               if num_heads % d == 0 and d * head_dim <= 128)


def _build_call(B, N, C, num_heads, heads_per_group, out_dtype,
                single_buffer_weights):
    kernel = functools.partial(attn_residual_kernel,
                               num_heads=num_heads,
                               heads_per_group=heads_per_group)

    def const_spec(shape):
        idx = lambda b, _n=len(shape): (0,) * _n
        if single_buffer_weights:
            # Constant-index blocks never change -> no need for double buffers.
            return pl.BlockSpec(shape, idx, pipeline_mode=pl.Buffered(1))
        return pl.BlockSpec(shape, idx)

    hd = C // num_heads
    # VMEM budget: double-buffered x/out blocks, (possibly single-buffered)
    # bf16 weights, the two bf16 scratches, and the largest in-flight f32
    # values (qkv and one head's (N, N) score/prob matrices).
    wbuf = 1 if single_buffer_weights else 2
    need = (2 * 2 * N * C * 4                       # x in + out blocks (f32, 2 bufs)
            + wbuf * (C * 3 * C + C * C) * 2        # bf16 weights
            + (N * 3 * C + N * C) * 2               # bf16 scratches
            + N * 3 * C * 4 + 2 * N * N * 4 + N * C * 4)   # live f32 values
    vmem_limit = int(min(max(2 * need, 32 * 2 ** 20), 64 * 2 ** 20))

    flops = B * (2 * N * C * 3 * C                         # QKV GEMM
                 + num_heads * 2 * (2 * N * N * hd)        # scores + p@v
                 + 2 * N * C * C)                          # proj GEMM
    transcendentals = B * num_heads * N * N                # exp
    bytes_accessed = (2 * B * N * C * 4
                      + (C * 3 * C + C * C) * 2 + (3 * C + C) * 4)

    return pl.pallas_call(
        kernel,
        out_shape=jax.ShapeDtypeStruct((B, N, C), out_dtype),
        grid_spec=pltpu.PrefetchScalarGridSpec(
            num_scalar_prefetch=0,
            grid=(B,),
            in_specs=[
                pl.BlockSpec((1, N, C), lambda b: (b, 0, 0)),   # x
                const_spec((C, 3 * C)),     # fused qkv weight (pre-T, scale folded)
                const_spec((1, 3 * C)),     # fused qkv bias (scale folded)
                const_spec((C, C)),         # proj weight (pre-T)
                const_spec((1, C)),         # proj bias
            ],
            out_specs=pl.BlockSpec((1, N, C), lambda b: (b, 0, 0)),
            scratch_shapes=[
                pltpu.VMEM((N, 3 * C), jnp.bfloat16),   # staged qkv (bf16)
                pltpu.VMEM((N, C), jnp.bfloat16),       # head-merge scratch (bf16)
            ],
        ),
        compiler_params=pltpu.CompilerParams(
            dimension_semantics=("parallel",),
            vmem_limit_bytes=vmem_limit),
        cost_estimate=pl.CostEstimate(flops=flops,
                                      transcendentals=transcendentals,
                                      bytes_accessed=bytes_accessed),
    )


def attention_residual(x, w_qkv, b_qkv, w_proj, b_proj, *, num_heads):
    """x: (B, N, C); w_qkv: (3C, C); b_qkv: (3C,); w_proj: (C, C); b_proj: (C,)."""
    B, N, C = x.shape
    assert C % num_heads == 0
    head_dim = C // num_heads
    scale = float(head_dim) ** -0.5
    heads_per_group = _heads_per_group(num_heads, head_dim)

    # One-time wrapper-side weight prep: transpose, fold the attention scale
    # into the q columns (weight folding), cast to bf16.  The kernel never
    # transposes or rescales.
    scale_row = jnp.concatenate([
        jnp.full((C,), scale, dtype=jnp.float32),
        jnp.ones((2 * C,), dtype=jnp.float32)])
    wqkv_t = (w_qkv.T.astype(jnp.float32) * scale_row[None, :]).astype(jnp.bfloat16)
    bqkv = (b_qkv.astype(jnp.float32) * scale_row).reshape(1, 3 * C)
    wproj_t = w_proj.T.astype(jnp.bfloat16)
    bproj = b_proj.astype(jnp.float32).reshape(1, C)

    args = (x, wqkv_t, bqkv, wproj_t, bproj)
    try:
        fn = _build_call(B, N, C, num_heads, heads_per_group, x.dtype,
                         single_buffer_weights=True)
        return jax.block_until_ready(fn(*args))
    except Exception:
        # Fallback: some Pallas versions reject pipeline_mode=pl.Buffered(1);
        # use default double-buffered weight blocks instead.
        fn = _build_call(B, N, C, num_heads, heads_per_group, x.dtype,
                         single_buffer_weights=False)
        return fn(*args)


def attention_residual_ref(x, w_qkv, b_qkv, w_proj, b_proj, *, num_heads):
    """Pure-JAX (f32) reference mirroring the PyTorch module."""
    B, N, C = x.shape
    hd = C // num_heads
    scale = float(hd) ** -0.5
    qkv = jnp.einsum('bnc,dc->bnd', x, w_qkv) + b_qkv
    qkv = qkv.reshape(B, N, 3, num_heads, hd).transpose(2, 0, 3, 1, 4)
    q, k, v = qkv[0], qkv[1], qkv[2]
    attn = jnp.einsum('bhqd,bhkd->bhqk', q, k) * scale
    attn = jax.nn.softmax(attn, axis=-1)
    y = jnp.einsum('bhqk,bhkd->bhqd', attn, v)
    y = y.transpose(0, 2, 1, 3).reshape(B, N, C)
    y = jnp.einsum('bnc,dc->bnd', y, w_proj) + b_proj
    return x + y


if __name__ == "__main__":
    B, N, C, H = 2, 8, 32, 4  # batch, tokens, embed dim, heads

    key = jax.random.PRNGKey(0)
    kx, kqkv, kbq, kproj, kbp = jax.random.split(key, 5)

    x = jax.random.normal(kx, (B, N, C), dtype=jnp.float32)
    w_qkv = 0.05 * jax.random.normal(kqkv, (3 * C, C), dtype=jnp.float32)
    b_qkv = 0.01 * jax.random.normal(kbq, (3 * C,), dtype=jnp.float32)
    w_proj = 0.05 * jax.random.normal(kproj, (C, C), dtype=jnp.float32)
    b_proj = 0.01 * jax.random.normal(kbp, (C,), dtype=jnp.float32)

    out = attention_residual(x, w_qkv, b_qkv, w_proj, b_proj, num_heads=H)
    out = jax.block_until_ready(out)

    ref = attention_residual_ref(x, w_qkv, b_qkv, w_proj, b_proj, num_heads=H)
    # bf16 MXU operands (f32 accumulation) + approx reciprocal => relaxed
    # tolerance vs the f32 reference.
    np.testing.assert_allclose(np.asarray(out), np.asarray(ref),
                               rtol=2e-2, atol=2e-2)

    print("KERNEL_OK")
</pallas_src>

<mosaic_0001>
module attributes {stable_mosaic.version = 11 : i64} {
  func.func @attn_residual_kernel(%arg0: i32, %arg1: memref<1x8x32xf32, #tpu.memory_space<vmem>>, %arg2: memref<32x96xbf16, #tpu.memory_space<vmem>>, %arg3: memref<1x96xf32, #tpu.memory_space<vmem>>, %arg4: memref<32x32xbf16, #tpu.memory_space<vmem>>, %arg5: memref<1x32xf32, #tpu.memory_space<vmem>>, %arg6: memref<1x8x32xf32, #tpu.memory_space<vmem>>, %arg7: memref<8x96xbf16, #tpu.memory_space<vmem>>, %arg8: memref<8x32xbf16, #tpu.memory_space<vmem>>) attributes {dimension_semantics = [#tpu.dimension_semantics<parallel>], iteration_bounds = array<i64: 2>, scalar_prefetch = 0 : i64, scratch_operands = 2 : i64, tpu.core_type = #tpu.core_type<tc>, window_params = [{transform_indices = @transform_0, window_bounds = array<i64: 1, 8, 32>}, {pipeline_mode = #tpu.pipeline_mode<synchronous>, transform_indices = @transform_1, window_bounds = array<i64: 32, 96>}, {pipeline_mode = #tpu.pipeline_mode<synchronous>, transform_indices = @transform_2, window_bounds = array<i64: 1, 96>}, {pipeline_mode = #tpu.pipeline_mode<synchronous>, transform_indices = @transform_3, window_bounds = array<i64: 32, 32>}, {pipeline_mode = #tpu.pipeline_mode<synchronous>, transform_indices = @transform_4, window_bounds = array<i64: 1, 32>}, {transform_indices = @transform_5, window_bounds = array<i64: 1, 8, 32>}]} {
    %c0 = arith.constant 0 : index
    %c0_0 = arith.constant 0 : index
    %c0_1 = arith.constant 0 : index
    %0 = vector.load %arg1[%c0, %c0_0, %c0_1] : memref<1x8x32xf32, #tpu.memory_space<vmem>>, vector<1x8x32xf32>
    %1 = vector.shape_cast %0 : vector<1x8x32xf32> to vector<8x32xf32>
    %2 = arith.truncf %1 : vector<8x32xf32> to vector<8x32xbf16>
    %c0_2 = arith.constant 0 : index
    %c0_3 = arith.constant 0 : index
    %3 = vector.load %arg2[%c0_2, %c0_3] : memref<32x96xbf16, #tpu.memory_space<vmem>>, vector<32x96xbf16>
    %cst = arith.constant dense<0.000000e+00> : vector<8x96xf32>
    %4 = tpu.matmul %2, %3, %cst {dimension_numbers = #tpu.dot_dimension_numbers<[1], [0], [0], [1], [0, 0, 1, 1], [], []>} : vector<8x32xbf16>, vector<32x96xbf16>, vector<8x96xf32> -> vector<8x96xf32>
    %c0_4 = arith.constant 0 : index
    %c0_5 = arith.constant 0 : index
    %5 = vector.load %arg3[%c0_4, %c0_5] : memref<1x96xf32, #tpu.memory_space<vmem>>, vector<1x96xf32>
    %6 = vector.broadcast %5 : vector<1x96xf32> to vector<8x96xf32>
    %7 = arith.addf %4, %6 : vector<8x96xf32>
    %8 = arith.truncf %7 : vector<8x96xf32> to vector<8x96xbf16>
    %c0_6 = arith.constant 0 : index
    %c0_7 = arith.constant 0 : index
    %9 = vector.load %arg7[%c0_6, %c0_7] : memref<8x96xbf16, #tpu.memory_space<vmem>>, vector<8x96xbf16>
    tpu.vector_store %arg7[%c0_6, %c0_7], %8 {strides = array<i32>} : memref<8x96xbf16, #tpu.memory_space<vmem>>, vector<8x96xbf16>,
    %c0_8 = arith.constant 0 : index
    %c0_9 = arith.constant 0 : index
    %10 = vector.load %arg7[%c0_8, %c0_9] : memref<8x96xbf16, #tpu.memory_space<vmem>>, vector<8x32xbf16>
    %c0_10 = arith.constant 0 : index
    %c32 = arith.constant 32 : index
    %11 = vector.load %arg7[%c0_10, %c32] : memref<8x96xbf16, #tpu.memory_space<vmem>>, vector<8x32xbf16>
    %c0_11 = arith.constant 0 : index
    %c64 = arith.constant 64 : index
    %12 = vector.load %arg7[%c0_11, %c64] : memref<8x96xbf16, #tpu.memory_space<vmem>>, vector<8x32xbf16>
    %13 = vector.extract_strided_slice %10 {offsets = [0, 0], sizes = [8, 8], strides = [1, 1]} : vector<8x32xbf16> to vector<8x8xbf16>
    %14 = vector.extract_strided_slice %11 {offsets = [0, 0], sizes = [8, 8], strides = [1, 1]} : vector<8x32xbf16> to vector<8x8xbf16>
    %15 = vector.extract_strided_slice %12 {offsets = [0, 0], sizes = [8, 8], strides = [1, 1]} : vector<8x32xbf16> to vector<8x8xbf16>
    %cst_12 = arith.constant dense<0.000000e+00> : vector<8x8xf32>
    %16 = tpu.matmul %13, %14, %cst_12 {dimension_numbers = #tpu.dot_dimension_numbers<[1], [1], [0], [0], [0, 0, 1, 0], [], []>} : vector<8x8xbf16>, vector<8x8xbf16>, vector<8x8xf32> -> vector<8x8xf32>
    %cst_13 = arith.constant dense<0xFF800000> : vector<8xf32>
    %17 = vector.multi_reduction <maximumf>, %16, %cst_13 [1] : vector<8x8xf32> to vector<8xf32>
    %18 = vector.shape_cast %17 : vector<8xf32> to vector<8x1xf32>
    %19 = vector.broadcast %18 : vector<8x1xf32> to vector<8x8xf32>
    %20 = arith.subf %16, %19 : vector<8x8xf32>
    %21 = math.exp %20 : vector<8x8xf32>
    %cst_14 = arith.constant dense<0.000000e+00> : vector<8xf32>
    %22 = vector.multi_reduction <add>, %21, %cst_14 [1] : vector<8x8xf32> to vector<8xf32>
    %23 = vector.shape_cast %22 : vector<8xf32> to vector<8x1xf32>
    %24 = tpu.reciprocal %23 {approx = true} : vector<8x1xf32> -> vector<8x1xf32>
    %25 = vector.broadcast %24 : vector<8x1xf32> to vector<8x8xf32>
    %26 = arith.mulf %21, %25 : vector<8x8xf32>
    %27 = arith.truncf %26 : vector<8x8xf32> to vector<8x8xbf16>
    %cst_15 = arith.constant dense<0.000000e+00> : vector<8x8xf32>
    %28 = tpu.matmul %27, %15, %cst_15 {dimension_numbers = #tpu.dot_dimension_numbers<[1], [0], [0], [1], [0, 0, 1, 1], [], []>} : vector<8x8xbf16>, vector<8x8xbf16>, vector<8x8xf32> -> vector<8x8xf32>
    %29 = arith.truncf %28 : vector<8x8xf32> to vector<8x8xbf16>
    %30 = vector.extract_strided_slice %10 {offsets = [0, 8], sizes = [8, 8], strides = [1, 1]} : vector<8x32xbf16> to vector<8x8xbf16>
    %31 = vector.extract_strided_slice %11 {offsets = [0, 8], sizes = [8, 8], strides = [1, 1]} : vector<8x32xbf16> to vector<8x8xbf16>
    %32 = vector.extract_strided_slice %12 {offsets = [0, 8], sizes = [8, 8], strides = [1, 1]} : vector<8x32xbf16> to vector<8x8xbf16>
    %cst_16 = arith.constant dense<0.000000e+00> : vector<8x8xf32>
    %33 = tpu.matmul %30, %31, %cst_16 {dimension_numbers = #tpu.dot_dimension_numbers<[1], [1], [0], [0], [0, 0, 1, 0], [], []>} : vector<8x8xbf16>, vector<8x8xbf16>, vector<8x8xf32> -> vector<8x8xf32>
    %cst_17 = arith.constant dense<0xFF800000> : vector<8xf32>
    %34 = vector.multi_reduction <maximumf>, %33, %cst_17 [1] : vector<8x8xf32> to vector<8xf32>
    %35 = vector.shape_cast %34 : vector<8xf32> to vector<8x1xf32>
    %36 = vector.broadcast %35 : vector<8x1xf32> to vector<8x8xf32>
    %37 = arith.subf %33, %36 : vector<8x8xf32>
    %38 = math.exp %37 : vector<8x8xf32>
    %cst_18 = arith.constant dense<0.000000e+00> : vector<8xf32>
    %39 = vector.multi_reduction <add>, %38, %cst_18 [1] : vector<8x8xf32> to vector<8xf32>
    %40 = vector.shape_cast %39 : vector<8xf32> to vector<8x1xf32>
    %41 = tpu.reciprocal %40 {approx = true} : vector<8x1xf32> -> vector<8x1xf32>
    %42 = vector.broadcast %41 : vector<8x1xf32> to vector<8x8xf32>
    %43 = arith.mulf %38, %42 : vector<8x8xf32>
    %44 = arith.truncf %43 : vector<8x8xf32> to vector<8x8xbf16>
    %cst_19 = arith.constant dense<0.000000e+00> : vector<8x8xf32>
    %45 = tpu.matmul %44, %32, %cst_19 {dimension_numbers = #tpu.dot_dimension_numbers<[1], [0], [0], [1], [0, 0, 1, 1], [], []>} : vector<8x8xbf16>, vector<8x8xbf16>, vector<8x8xf32> -> vector<8x8xf32>
    %46 = arith.truncf %45 : vector<8x8xf32> to vector<8x8xbf16>
    %47 = vector.extract_strided_slice %10 {offsets = [0, 16], sizes = [8, 8], strides = [1, 1]} : vector<8x32xbf16> to vector<8x8xbf16>
    %48 = vector.extract_strided_slice %11 {offsets = [0, 16], sizes = [8, 8], strides = [1, 1]} : vector<8x32xbf16> to vector<8x8xbf16>
    %49 = vector.extract_strided_slice %12 {offsets = [0, 16], sizes = [8, 8], strides = [1, 1]} : vector<8x32xbf16> to vector<8x8xbf16>
    %cst_20 = arith.constant dense<0.000000e+00> : vector<8x8xf32>
    %50 = tpu.matmul %47, %48, %cst_20 {dimension_numbers = #tpu.dot_dimension_numbers<[1], [1], [0], [0], [0, 0, 1, 0], [], []>} : vector<8x8xbf16>, vector<8x8xbf16>, vector<8x8xf32> -> vector<8x8xf32>
    %cst_21 = arith.constant dense<0xFF800000> : vector<8xf32>
    %51 = vector.multi_reduction <maximumf>, %50, %cst_21 [1] : vector<8x8xf32> to vector<8xf32>
    %52 = vector.shape_cast %51 : vector<8xf32> to vector<8x1xf32>
    %53 = vector.broadcast %52 : vector<8x1xf32> to vector<8x8xf32>
    %54 = arith.subf %50, %53 : vector<8x8xf32>
    %55 = math.exp %54 : vector<8x8xf32>
    %cst_22 = arith.constant dense<0.000000e+00> : vector<8xf32>
    %56 = vector.multi_reduction <add>, %55, %cst_22 [1] : vector<8x8xf32> to vector<8xf32>
    %57 = vector.shape_cast %56 : vector<8xf32> to vector<8x1xf32>
    %58 = tpu.reciprocal %57 {approx = true} : vector<8x1xf32> -> vector<8x1xf32>
    %59 = vector.broadcast %58 : vector<8x1xf32> to vector<8x8xf32>
    %60 = arith.mulf %55, %59 : vector<8x8xf32>
    %61 = arith.truncf %60 : vector<8x8xf32> to vector<8x8xbf16>
    %cst_23 = arith.constant dense<0.000000e+00> : vector<8x8xf32>
    %62 = tpu.matmul %61, %49, %cst_23 {dimension_numbers = #tpu.dot_dimension_numbers<[1], [0], [0], [1], [0, 0, 1, 1], [], []>} : vector<8x8xbf16>, vector<8x8xbf16>, vector<8x8xf32> -> vector<8x8xf32>
    %63 = arith.truncf %62 : vector<8x8xf32> to vector<8x8xbf16>
    %64 = vector.extract_strided_slice %10 {offsets = [0, 24], sizes = [8, 8], strides = [1, 1]} : vector<8x32xbf16> to vector<8x8xbf16>
    %65 = vector.extract_strided_slice %11 {offsets = [0, 24], sizes = [8, 8], strides = [1, 1]} : vector<8x32xbf16> to vector<8x8xbf16>
    %66 = vector.extract_strided_slice %12 {offsets = [0, 24], sizes = [8, 8], strides = [1, 1]} : vector<8x32xbf16> to vector<8x8xbf16>
    %cst_24 = arith.constant dense<0.000000e+00> : vector<8x8xf32>
    %67 = tpu.matmul %64, %65, %cst_24 {dimension_numbers = #tpu.dot_dimension_numbers<[1], [1], [0], [0], [0, 0, 1, 0], [], []>} : vector<8x8xbf16>, vector<8x8xbf16>, vector<8x8xf32> -> vector<8x8xf32>
    %cst_25 = arith.constant dense<0xFF800000> : vector<8xf32>
    %68 = vector.multi_reduction <maximumf>, %67, %cst_25 [1] : vector<8x8xf32> to vector<8xf32>
    %69 = vector.shape_cast %68 : vector<8xf32> to vector<8x1xf32>
    %70 = vector.broadcast %69 : vector<8x1xf32> to vector<8x8xf32>
    %71 = arith.subf %67, %70 : vector<8x8xf32>
    %72 = math.exp %71 : vector<8x8xf32>
    %cst_26 = arith.constant dense<0.000000e+00> : vector<8xf32>
    %73 = vector.multi_reduction <add>, %72, %cst_26 [1] : vector<8x8xf32> to vector<8xf32>
    %74 = vector.shape_cast %73 : vector<8xf32> to vector<8x1xf32>
    %75 = tpu.reciprocal %74 {approx = true} : vector<8x1xf32> -> vector<8x1xf32>
    %76 = vector.broadcast %75 : vector<8x1xf32> to vector<8x8xf32>
    %77 = arith.mulf %72, %76 : vector<8x8xf32>
    %78 = arith.truncf %77 : vector<8x8xf32> to vector<8x8xbf16>
    %cst_27 = arith.constant dense<0.000000e+00> : vector<8x8xf32>
    %79 = tpu.matmul %78, %66, %cst_27 {dimension_numbers = #tpu.dot_dimension_numbers<[1], [0], [0], [1], [0, 0, 1, 1], [], []>} : vector<8x8xbf16>, vector<8x8xbf16>, vector<8x8xf32> -> vector<8x8xf32>
    %80 = arith.truncf %79 : vector<8x8xf32> to vector<8x8xbf16>
    %81 = tpu.concatenate %29, %46, %63, %80 in 1 : vector<8x8xbf16>, vector<8x8xbf16>, vector<8x8xbf16>, vector<8x8xbf16> -> vector<8x32xbf16>
    %c0_28 = arith.constant 0 : index
    %c0_29 = arith.constant 0 : index
    %82 = vector.load %arg8[%c0_28, %c0_29] : memref<8x32xbf16, #tpu.memory_space<vmem>>, vector<8x32xbf16>
    tpu.vector_store %arg8[%c0_28, %c0_29], %81 {strides = array<i32>} : memref<8x32xbf16, #tpu.memory_space<vmem>>, vector<8x32xbf16>,
    %c0_30 = arith.constant 0 : index
    %c0_31 = arith.constant 0 : index
    %83 = vector.load %arg8[%c0_30, %c0_31] : memref<8x32xbf16, #tpu.memory_space<vmem>>, vector<8x32xbf16>
    %c0_32 = arith.constant 0 : index
    %c0_33 = arith.constant 0 : index
    %84 = vector.load %arg4[%c0_32, %c0_33] : memref<32x32xbf16, #tpu.memory_space<vmem>>, vector<32x32xbf16>
    %cst_34 = arith.constant dense<0.000000e+00> : vector<8x32xf32>
    %85 = tpu.matmul %83, %84, %cst_34 {dimension_numbers = #tpu.dot_dimension_numbers<[1], [0], [0], [1], [0, 0, 1, 1], [], []>} : vector<8x32xbf16>, vector<32x32xbf16>, vector<8x32xf32> -> vector<8x32xf32>
    %c0_35 = arith.constant 0 : index
    %c0_36 = arith.constant 0 : index
    %86 = vector.load %arg5[%c0_35, %c0_36] : memref<1x32xf32, #tpu.memory_space<vmem>>, vector<1x32xf32>
    %87 = vector.broadcast %86 : vector<1x32xf32> to vector<8x32xf32>
    %88 = arith.addf %85, %87 : vector<8x32xf32>
    %c0_37 = arith.constant 0 : index
    %c0_38 = arith.constant 0 : index
    %c0_39 = arith.constant 0 : index
    %89 = vector.load %arg1[%c0_37, %c0_38, %c0_39] : memref<1x8x32xf32, #tpu.memory_space<vmem>>, vector<1x8x32xf32>
    %90 = vector.shape_cast %89 : vector<1x8x32xf32> to vector<8x32xf32>
    %91 = arith.addf %90, %88 : vector<8x32xf32>
    %c0_40 = arith.constant 0 : index
    %c0_41 = arith.constant 0 : index
    %c0_42 = arith.constant 0 : index
    %92 = vector.load %arg6[%c0_40, %c0_41, %c0_42] : memref<1x8x32xf32, #tpu.memory_space<vmem>>, vector<1x8x32xf32>
    %93 = vector.shape_cast %92 : vector<1x8x32xf32> to vector<8x32xf32>
    %94 = vector.shape_cast %91 : vector<8x32xf32> to vector<1x8x32xf32>
    tpu.vector_store %arg6[%c0_40, %c0_41, %c0_42], %94 {strides = array<i32>} : memref<1x8x32xf32, #tpu.memory_space<vmem>>, vector<1x8x32xf32>,
    return
  }
  func.func @transform_0(%arg0: i32) -> (i32, i32, i32) {
    %c0_i32 = arith.constant 0 : i32
    %c0_i32_0 = arith.constant 0 : i32
    %c0_i32_1 = arith.constant 0 : i32
    return %arg0, %c0_i32, %c0_i32_0 : i32, i32, i32
  }
  func.func @transform_1(%arg0: i32) -> (i32, i32) {
    %c0_i32 = arith.constant 0 : i32
    %c0_i32_0 = arith.constant 0 : i32
    %c0_i32_1 = arith.constant 0 : i32
    return %c0_i32, %c0_i32_0 : i32, i32
  }
  func.func @transform_2(%arg0: i32) -> (i32, i32) {
    %c0_i32 = arith.constant 0 : i32
    %c0_i32_0 = arith.constant 0 : i32
    %c0_i32_1 = arith.constant 0 : i32
    return %c0_i32, %c0_i32_0 : i32, i32
  }
  func.func @transform_3(%arg0: i32) -> (i32, i32) {
    %c0_i32 = arith.constant 0 : i32
    %c0_i32_0 = arith.constant 0 : i32
    %c0_i32_1 = arith.constant 0 : i32
    return %c0_i32, %c0_i32_0 : i32, i32
  }
  func.func @transform_4(%arg0: i32) -> (i32, i32) {
    %c0_i32 = arith.constant 0 : i32
    %c0_i32_0 = arith.constant 0 : i32
    %c0_i32_1 = arith.constant 0 : i32
    return %c0_i32, %c0_i32_0 : i32, i32
  }
  func.func @transform_5(%arg0: i32) -> (i32, i32, i32) {
    %c0_i32 = arith.constant 0 : i32
    %c0_i32_0 = arith.constant 0 : i32
    %c0_i32_1 = arith.constant 0 : i32
    return %arg0, %c0_i32, %c0_i32_0 : i32, i32, i32
  }
}

module attributes {stable_mosaic.version = 11 : i64} {
  func.func @attn_residual_kernel(%arg0: i32, %arg1: memref<1x8x32xf32, #tpu.memory_space<vmem>>, %arg2: memref<32x96xbf16, #tpu.memory_space<vmem>>, %arg3: memref<1x96xf32, #tpu.memory_space<vmem>>, %arg4: memref<32x32xbf16, #tpu.memory_space<vmem>>, %arg5: memref<1x32xf32, #tpu.memory_space<vmem>>, %arg6: memref<1x8x32xf32, #tpu.memory_space<vmem>>, %arg7: memref<8x96xbf16, #tpu.memory_space<vmem>>, %arg8: memref<8x32xbf16, #tpu.memory_space<vmem>>) attributes {dimension_semantics = [#tpu.dimension_semantics<parallel>], iteration_bounds = array<i64: 2>, scalar_prefetch = 0 : i64, scratch_operands = 2 : i64, tpu.core_type = #tpu.core_type<tc>, window_params = [{transform_indices = @transform_0, window_bounds = array<i64: 1, 8, 32>}, {pipeline_mode = #tpu.pipeline_mode<synchronous>, transform_indices = @transform_1, window_bounds = array<i64: 32, 96>}, {pipeline_mode = #tpu.pipeline_mode<synchronous>, transform_indices = @transform_2, window_bounds = array<i64: 1, 96>}, {pipeline_mode = #tpu.pipeline_mode<synchronous>, transform_indices = @transform_3, window_bounds = array<i64: 32, 32>}, {pipeline_mode = #tpu.pipeline_mode<synchronous>, transform_indices = @transform_4, window_bounds = array<i64: 1, 32>}, {transform_indices = @transform_5, window_bounds = array<i64: 1, 8, 32>}]} {
    %c0 = arith.constant 0 : index
    %c0_0 = arith.constant 0 : index
    %c0_1 = arith.constant 0 : index
    %0 = vector.load %arg1[%c0, %c0_0, %c0_1] : memref<1x8x32xf32, #tpu.memory_space<vmem>>, vector<1x8x32xf32>
    %1 = vector.shape_cast %0 : vector<1x8x32xf32> to vector<8x32xf32>
    %2 = arith.truncf %1 : vector<8x32xf32> to vector<8x32xbf16>
    %c0_2 = arith.constant 0 : index
    %c0_3 = arith.constant 0 : index
    %3 = vector.load %arg2[%c0_2, %c0_3] : memref<32x96xbf16, #tpu.memory_space<vmem>>, vector<32x96xbf16>
    %cst = arith.constant dense<0.000000e+00> : vector<8x96xf32>
    %4 = tpu.matmul %2, %3, %cst {dimension_numbers = #tpu.dot_dimension_numbers<[1], [0], [0], [1], [0, 0, 1, 1], [], []>} : vector<8x32xbf16>, vector<32x96xbf16>, vector<8x96xf32> -> vector<8x96xf32>
    %c0_4 = arith.constant 0 : index
    %c0_5 = arith.constant 0 : index
    %5 = vector.load %arg3[%c0_4, %c0_5] : memref<1x96xf32, #tpu.memory_space<vmem>>, vector<1x96xf32>
    %6 = vector.broadcast %5 : vector<1x96xf32> to vector<8x96xf32>
    %7 = arith.addf %4, %6 : vector<8x96xf32>
    %8 = arith.truncf %7 : vector<8x96xf32> to vector<8x96xbf16>
    %c0_6 = arith.constant 0 : index
    %c0_7 = arith.constant 0 : index
    %9 = vector.load %arg7[%c0_6, %c0_7] : memref<8x96xbf16, #tpu.memory_space<vmem>>, vector<8x96xbf16>
    tpu.vector_store %arg7[%c0_6, %c0_7], %8 {strides = array<i32>} : memref<8x96xbf16, #tpu.memory_space<vmem>>, vector<8x96xbf16>,
    %c0_8 = arith.constant 0 : index
    %c0_9 = arith.constant 0 : index
    %10 = vector.load %arg7[%c0_8, %c0_9] : memref<8x96xbf16, #tpu.memory_space<vmem>>, vector<8x32xbf16>
    %c0_10 = arith.constant 0 : index
    %c32 = arith.constant 32 : index
    %11 = vector.load %arg7[%c0_10, %c32] : memref<8x96xbf16, #tpu.memory_space<vmem>>, vector<8x32xbf16>
    %c0_11 = arith.constant 0 : index
    %c64 = arith.constant 64 : index
    %12 = vector.load %arg7[%c0_11, %c64] : memref<8x96xbf16, #tpu.memory_space<vmem>>, vector<8x32xbf16>
    %13 = vector.extract_strided_slice %10 {offsets = [0, 0], sizes = [8, 8], strides = [1, 1]} : vector<8x32xbf16> to vector<8x8xbf16>
    %14 = vector.extract_strided_slice %11 {offsets = [0, 0], sizes = [8, 8], strides = [1, 1]} : vector<8x32xbf16> to vector<8x8xbf16>
    %15 = vector.extract_strided_slice %12 {offsets = [0, 0], sizes = [8, 8], strides = [1, 1]} : vector<8x32xbf16> to vector<8x8xbf16>
    %cst_12 = arith.constant dense<0.000000e+00> : vector<8x8xf32>
    %16 = tpu.matmul %13, %14, %cst_12 {dimension_numbers = #tpu.dot_dimension_numbers<[1], [1], [0], [0], [0, 0, 1, 0], [], []>} : vector<8x8xbf16>, vector<8x8xbf16>, vector<8x8xf32> -> vector<8x8xf32>
    %cst_13 = arith.constant dense<0xFF800000> : vector<8xf32>
    %17 = vector.multi_reduction <maximumf>, %16, %cst_13 [1] : vector<8x8xf32> to vector<8xf32>
    %18 = vector.shape_cast %17 : vector<8xf32> to vector<8x1xf32>
    %19 = vector.broadcast %18 : vector<8x1xf32> to vector<8x8xf32>
    %20 = arith.subf %16, %19 : vector<8x8xf32>
    %21 = math.exp %20 : vector<8x8xf32>
    %cst_14 = arith.constant dense<0.000000e+00> : vector<8xf32>
    %22 = vector.multi_reduction <add>, %21, %cst_14 [1] : vector<8x8xf32> to vector<8xf32>
    %23 = vector.shape_cast %22 : vector<8xf32> to vector<8x1xf32>
    %24 = tpu.reciprocal %23 {approx = true} : vector<8x1xf32> -> vector<8x1xf32>
    %25 = vector.broadcast %24 : vector<8x1xf32> to vector<8x8xf32>
    %26 = arith.mulf %21, %25 : vector<8x8xf32>
    %27 = arith.truncf %26 : vector<8x8xf32> to vector<8x8xbf16>
    %cst_15 = arith.constant dense<0.000000e+00> : vector<8x8xf32>
    %28 = tpu.matmul %27, %15, %cst_15 {dimension_numbers = #tpu.dot_dimension_numbers<[1], [0], [0], [1], [0, 0, 1, 1], [], []>} : vector<8x8xbf16>, vector<8x8xbf16>, vector<8x8xf32> -> vector<8x8xf32>
    %29 = arith.truncf %28 : vector<8x8xf32> to vector<8x8xbf16>
    %30 = vector.extract_strided_slice %10 {offsets = [0, 8], sizes = [8, 8], strides = [1, 1]} : vector<8x32xbf16> to vector<8x8xbf16>
    %31 = vector.extract_strided_slice %11 {offsets = [0, 8], sizes = [8, 8], strides = [1, 1]} : vector<8x32xbf16> to vector<8x8xbf16>
    %32 = vector.extract_strided_slice %12 {offsets = [0, 8], sizes = [8, 8], strides = [1, 1]} : vector<8x32xbf16> to vector<8x8xbf16>
    %cst_16 = arith.constant dense<0.000000e+00> : vector<8x8xf32>
    %33 = tpu.matmul %30, %31, %cst_16 {dimension_numbers = #tpu.dot_dimension_numbers<[1], [1], [0], [0], [0, 0, 1, 0], [], []>} : vector<8x8xbf16>, vector<8x8xbf16>, vector<8x8xf32> -> vector<8x8xf32>
    %cst_17 = arith.constant dense<0xFF800000> : vector<8xf32>
    %34 = vector.multi_reduction <maximumf>, %33, %cst_17 [1] : vector<8x8xf32> to vector<8xf32>
    %35 = vector.shape_cast %34 : vector<8xf32> to vector<8x1xf32>
    %36 = vector.broadcast %35 : vector<8x1xf32> to vector<8x8xf32>
    %37 = arith.subf %33, %36 : vector<8x8xf32>
    %38 = math.exp %37 : vector<8x8xf32>
    %cst_18 = arith.constant dense<0.000000e+00> : vector<8xf32>
    %39 = vector.multi_reduction <add>, %38, %cst_18 [1] : vector<8x8xf32> to vector<8xf32>
    %40 = vector.shape_cast %39 : vector<8xf32> to vector<8x1xf32>
    %41 = tpu.reciprocal %40 {approx = true} : vector<8x1xf32> -> vector<8x1xf32>
    %42 = vector.broadcast %41 : vector<8x1xf32> to vector<8x8xf32>
    %43 = arith.mulf %38, %42 : vector<8x8xf32>
    %44 = arith.truncf %43 : vector<8x8xf32> to vector<8x8xbf16>
    %cst_19 = arith.constant dense<0.000000e+00> : vector<8x8xf32>
    %45 = tpu.matmul %44, %32, %cst_19 {dimension_numbers = #tpu.dot_dimension_numbers<[1], [0], [0], [1], [0, 0, 1, 1], [], []>} : vector<8x8xbf16>, vector<8x8xbf16>, vector<8x8xf32> -> vector<8x8xf32>
    %46 = arith.truncf %45 : vector<8x8xf32> to vector<8x8xbf16>
    %47 = vector.extract_strided_slice %10 {offsets = [0, 16], sizes = [8, 8], strides = [1, 1]} : vector<8x32xbf16> to vector<8x8xbf16>
    %48 = vector.extract_strided_slice %11 {offsets = [0, 16], sizes = [8, 8], strides = [1, 1]} : vector<8x32xbf16> to vector<8x8xbf16>
    %49 = vector.extract_strided_slice %12 {offsets = [0, 16], sizes = [8, 8], strides = [1, 1]} : vector<8x32xbf16> to vector<8x8xbf16>
    %cst_20 = arith.constant dense<0.000000e+00> : vector<8x8xf32>
    %50 = tpu.matmul %47, %48, %cst_20 {dimension_numbers = #tpu.dot_dimension_numbers<[1], [1], [0], [0], [0, 0, 1, 0], [], []>} : vector<8x8xbf16>, vector<8x8xbf16>, vector<8x8xf32> -> vector<8x8xf32>
    %cst_21 = arith.constant dense<0xFF800000> : vector<8xf32>
    %51 = vector.multi_reduction <maximumf>, %50, %cst_21 [1] : vector<8x8xf32> to vector<8xf32>
    %52 = vector.shape_cast %51 : vector<8xf32> to vector<8x1xf32>
    %53 = vector.broadcast %52 : vector<8x1xf32> to vector<8x8xf32>
    %54 = arith.subf %50, %53 : vector<8x8xf32>
    %55 = math.exp %54 : vector<8x8xf32>
    %cst_22 = arith.constant dense<0.000000e+00> : vector<8xf32>
    %56 = vector.multi_reduction <add>, %55, %cst_22 [1] : vector<8x8xf32> to vector<8xf32>
    %57 = vector.shape_cast %56 : vector<8xf32> to vector<8x1xf32>
    %58 = tpu.reciprocal %57 {approx = true} : vector<8x1xf32> -> vector<8x1xf32>
    %59 = vector.broadcast %58 : vector<8x1xf32> to vector<8x8xf32>
    %60 = arith.mulf %55, %59 : vector<8x8xf32>
    %61 = arith.truncf %60 : vector<8x8xf32> to vector<8x8xbf16>
    %cst_23 = arith.constant dense<0.000000e+00> : vector<8x8xf32>
    %62 = tpu.matmul %61, %49, %cst_23 {dimension_numbers = #tpu.dot_dimension_numbers<[1], [0], [0], [1], [0, 0, 1, 1], [], []>} : vector<8x8xbf16>, vector<8x8xbf16>, vector<8x8xf32> -> vector<8x8xf32>
    %63 = arith.truncf %62 : vector<8x8xf32> to vector<8x8xbf16>
    %64 = vector.extract_strided_slice %10 {offsets = [0, 24], sizes = [8, 8], strides = [1, 1]} : vector<8x32xbf16> to vector<8x8xbf16>
    %65 = vector.extract_strided_slice %11 {offsets = [0, 24], sizes = [8, 8], strides = [1, 1]} : vector<8x32xbf16> to vector<8x8xbf16>
    %66 = vector.extract_strided_slice %12 {offsets = [0, 24], sizes = [8, 8], strides = [1, 1]} : vector<8x32xbf16> to vector<8x8xbf16>
    %cst_24 = arith.constant dense<0.000000e+00> : vector<8x8xf32>
    %67 = tpu.matmul %64, %65, %cst_24 {dimension_numbers = #tpu.dot_dimension_numbers<[1], [1], [0], [0], [0, 0, 1, 0], [], []>} : vector<8x8xbf16>, vector<8x8xbf16>, vector<8x8xf32> -> vector<8x8xf32>
    %cst_25 = arith.constant dense<0xFF800000> : vector<8xf32>
    %68 = vector.multi_reduction <maximumf>, %67, %cst_25 [1] : vector<8x8xf32> to vector<8xf32>
    %69 = vector.shape_cast %68 : vector<8xf32> to vector<8x1xf32>
    %70 = vector.broadcast %69 : vector<8x1xf32> to vector<8x8xf32>
    %71 = arith.subf %67, %70 : vector<8x8xf32>
    %72 = math.exp %71 : vector<8x8xf32>
    %cst_26 = arith.constant dense<0.000000e+00> : vector<8xf32>
    %73 = vector.multi_reduction <add>, %72, %cst_26 [1] : vector<8x8xf32> to vector<8xf32>
    %74 = vector.shape_cast %73 : vector<8xf32> to vector<8x1xf32>
    %75 = tpu.reciprocal %74 {approx = true} : vector<8x1xf32> -> vector<8x1xf32>
    %76 = vector.broadcast %75 : vector<8x1xf32> to vector<8x8xf32>
    %77 = arith.mulf %72, %76 : vector<8x8xf32>
    %78 = arith.truncf %77 : vector<8x8xf32> to vector<8x8xbf16>
    %cst_27 = arith.constant dense<0.000000e+00> : vector<8x8xf32>
    %79 = tpu.matmul %78, %66, %cst_27 {dimension_numbers = #tpu.dot_dimension_numbers<[1], [0], [0], [1], [0, 0, 1, 1], [], []>} : vector<8x8xbf16>, vector<8x8xbf16>, vector<8x8xf32> -> vector<8x8xf32>
    %80 = arith.truncf %79 : vector<8x8xf32> to vector<8x8xbf16>
    %81 = tpu.concatenate %29, %46, %63, %80 in 1 : vector<8x8xbf16>, vector<8x8xbf16>, vector<8x8xbf16>, vector<8x8xbf16> -> vector<8x32xbf16>
    %c0_28 = arith.constant 0 : index
    %c0_29 = arith.constant 0 : index
    %82 = vector.load %arg8[%c0_28, %c0_29] : memref<8x32xbf16, #tpu.memory_space<vmem>>, vector<8x32xbf16>
    tpu.vector_store %arg8[%c0_28, %c0_29], %81 {strides = array<i32>} : memref<8x32xbf16, #tpu.memory_space<vmem>>, vector<8x32xbf16>,
    %c0_30 = arith.constant 0 : index
    %c0_31 = arith.constant 0 : index
    %83 = vector.load %arg8[%c0_30, %c0_31] : memref<8x32xbf16, #tpu.memory_space<vmem>>, vector<8x32xbf16>
    %c0_32 = arith.constant 0 : index
    %c0_33 = arith.constant 0 : index
    %84 = vector.load %arg4[%c0_32, %c0_33] : memref<32x32xbf16, #tpu.memory_space<vmem>>, vector<32x32xbf16>
    %cst_34 = arith.constant dense<0.000000e+00> : vector<8x32xf32>
    %85 = tpu.matmul %83, %84, %cst_34 {dimension_numbers = #tpu.dot_dimension_numbers<[1], [0], [0], [1], [0, 0, 1, 1], [], []>} : vector<8x32xbf16>, vector<32x32xbf16>, vector<8x32xf32> -> vector<8x32xf32>
    %c0_35 = arith.constant 0 : index
    %c0_36 = arith.constant 0 : index
    %86 = vector.load %arg5[%c0_35, %c0_36] : memref<1x32xf32, #tpu.memory_space<vmem>>, vector<1x32xf32>
    %87 = vector.broadcast %86 : vector<1x32xf32> to vector<8x32xf32>
    %88 = arith.addf %85, %87 : vector<8x32xf32>
    %c0_37 = arith.constant 0 : index
    %c0_38 = arith.constant 0 : index
    %c0_39 = arith.constant 0 : index
    %89 = vector.load %arg1[%c0_37, %c0_38, %c0_39] : memref<1x8x32xf32, #tpu.memory_space<vmem>>, vector<1x8x32xf32>
    %90 = vector.shape_cast %89 : vector<1x8x32xf32> to vector<8x32xf32>
    %91 = arith.addf %90, %88 : vector<8x32xf32>
    %c0_40 = arith.constant 0 : index
    %c0_41 = arith.constant 0 : index
    %c0_42 = arith.constant 0 : index
    %92 = vector.load %arg6[%c0_40, %c0_41, %c0_42] : memref<1x8x32xf32, #tpu.memory_space<vmem>>, vector<1x8x32xf32>
    %93 = vector.shape_cast %92 : vector<1x8x32xf32> to vector<8x32xf32>
    %94 = vector.shape_cast %91 : vector<8x32xf32> to vector<1x8x32xf32>
    tpu.vector_store %arg6[%c0_40, %c0_41, %c0_42], %94 {strides = array<i32>} : memref<1x8x32xf32, #tpu.memory_space<vmem>>, vector<1x8x32xf32>,
    return
  }
  func.func @transform_0(%arg0: i32) -> (i32, i32, i32) {
    %c0_i32 = arith.constant 0 : i32
    %c0_i32_0 = arith.constant 0 : i32
    %c0_i32_1 = arith.constant 0 : i32
    return %arg0, %c0_i32, %c0_i32_0 : i32, i32, i32
  }
  func.func @transform_1(%arg0: i32) -> (i32, i32) {
    %c0_i32 = arith.constant 0 : i32
    %c0_i32_0 = arith.constant 0 : i32
    %c0_i32_1 = arith.constant 0 : i32
    return %c0_i32, %c0_i32_0 : i32, i32
  }
  func.func @transform_2(%arg0: i32) -> (i32, i32) {
    %c0_i32 = arith.constant 0 : i32
    %c0_i32_0 = arith.constant 0 : i32
    %c0_i32_1 = arith.constant 0 : i32
    return %c0_i32, %c0_i32_0 : i32, i32
  }
  func.func @transform_3(%arg0: i32) -> (i32, i32) {
    %c0_i32 = arith.constant 0 : i32
    %c0_i32_0 = arith.constant 0 : i32
    %c0_i32_1 = arith.constant 0 : i32
    return %c0_i32, %c0_i32_0 : i32, i32
  }
  func.func @transform_4(%arg0: i32) -> (i32, i32) {
    %c0_i32 = arith.constant 0 : i32
    %c0_i32_0 = arith.constant 0 : i32
    %c0_i32_1 = arith.constant 0 : i32
    return %c0_i32, %c0_i32_0 : i32, i32
  }
  func.func @transform_5(%arg0: i32) -> (i32, i32, i32) {
    %c0_i32 = arith.constant 0 : i32
    %c0_i32_0 = arith.constant 0 : i32
    %c0_i32_1 = arith.constant 0 : i32
    return %arg0, %c0_i32, %c0_i32_0 : i32, i32, i32
  }
}

</mosaic_0001>

<bundles_post_ra>
// kernel: tpu_custom_call.1
= control target key start
LH: loop header
LB: loop body
LE: loop exit
PB: predicated region body
PF: predicated region fallthrough
CT: control target
= control target key end

     0   :  { %10 = vsyncpa [#allocation5], 0  ;;  %s1736_s0 = inlined_call_operand.hbm [shape: f32[2,8,32], index: 0, kind: input, shape index: {}]   ;;  %s1737_s1 = inlined_call_operand.hbm [shape: bf16[32,96], index: 1, kind: input, shape index: {}]   ;;  %s1738_s2 = inlined_call_operand.vmem [shape: f32[1,96], index: 2, kind: input, shape index: {}]   ;;  %s1739_s3 = inlined_call_operand.hbm [shape: bf16[32,32], index: 3, kind: input, shape index: {}]   ;;  %s1740_s4 = inlined_call_operand.vmem [shape: f32[1,32], index: 4, kind: input, shape index: {}]   ;;  %s1741_s5 = inlined_call_operand.hbm [shape: f32[2,8,32], index: 5, kind: output, shape index: {}]  }
   0x1   :  { %12 = vsyncpa [#allocation5 + $0x1], 0 }
   0x2   :  { %13 = vsyncpa [#allocation8], 0 }
   0x3   :  { %14 = vsyncpa [#allocation6], 0 }
   0x4   :  { %16 = vsyncpa [#allocation6 + $0x1], 0  ;;  %s1419_s18 = smov 0   ;;  %s1421_s19 = smov 0  }
   0x5   :  { %s1423_s20 = smov 0   ;;  %s1425_s21 = smov 0  }
   0x6 LB: > { %s1440_s22 = sadd.s32 4294967295, %s1365_s21   ;;  %s984_s23 = sadd.s32 4294967294, %s1365_s21   ;;  %s1365_s21 = sphi %s1425_s21, %s1761_s21   ;;  %s1361_s20 = sphi %s1423_s20, %s1760_s20   ;;  %s1357_s19 = sphi %s1421_s19, %s1759_s19   ;;  %s1353_s18 = sphi %s1419_s18, %s1758_s18  }
   0x7   : > { %p42_p0 = scmp.ne.s32.totalorder %s1357_s19, %s1353_s18  ;;  %p1742_p1 = scmp.eq.s32.totalorder %s1440_s22, 0 }
   0x8   : > { %p156_p3 = scmp.eq.s32.totalorder %s984_s23, 1  ;;  %p985_p5 = scmp.ge.s32.totalorder %s1365_s21, 1 }
   0x9   : > { %p1449_p4 = por %p1742_p1, %p42_p0  ;;  %p163_p7 = scmp.lt.s32.totalorder %s1365_s21, 3 }
   0xa   : > { %p1454_p6 = por %p156_p3, %p42_p0  ;;  %s1367_s27 = smov [#allocation7]  }
   0xb   : > { %s1745_s24 = scalar_select %p1449_p4, 1, 0 }
   0xc   : > { %s1746_s25 = scalar_select %p1454_p6, 1, 0 }
   0xd   : > { %p1459_p8 = pnand %p985_p5, %p163_p7  ;;  %s175_s28 = sshll.u32 %s1367_s27, 4  ;;  %s1463_s28 = int_to_ptr.vmem [resolvable:$true] %s175_s28 }
   0xe   : > { %s1368_s30 = smov [#allocation9]   ;;  %s1209_s9 = scalar_lea.hbm %s1737_s1, 256 }
   0xf   : > { %p1115_p9 = pneg %p1459_p8  ;;  %s191_s6 = sshll.u32 %s1368_s30, 4  ;;  %s1474_s6 = int_to_ptr.vmem [resolvable:$true] %s191_s6 }
  0x10   : > { %p1210_p12 = scmp.ne.s32.totalorder %s1737_s1, %s1209_s9  ;;  %p1216_p5 = scmp.lt.u32.totalorder %s1209_s9, %s1737_s1 }
  0x11   : > { %p1470_p11 = pnand %p1115_p9, %p1742_p1 }
  0x13   : > { %p1211_p13 = pneg %p1470_p11 }
  0x15   : > { %p1212_p0 = pnand %p1211_p13, %p1210_p12 }
  0x17   : > { %p1213_p3 = pneg %p1212_p0 }
  0x19   : > { %p1218_p7 = pnand %p1216_p5, %p1213_p3 }
  0x1b   : > { %1221 = shalt.err (!%p1218_p7)
}
  0x1c   : > { %s1222_s14 = scalar_lea.vmem %s1463_s28, 256  ;;  %p1230_p2 = scmp.lt.s32.totalorder %s1463_s28, %s1463_s28 }
  0x1d   : > { %p1223_p9 = scmp.ne.s32.totalorder %s1463_s28, %s1222_s14  ;;  %p1231_p12 = scmp.lt.s32.totalorder %s1222_s14, %s1222_s14 }
  0x1f   : > { %p1225_p10 = pnand %p1223_p9, %p1211_p13  ;;  %p1232_p0 = por %p1231_p12, %p1230_p2 }
  0x21   : > { %p1226_p1 = pneg %p1225_p10 }
  0x23   : > { %p1233_p6 = pnand %p1232_p0, %p1226_p1 }
  0x25   : > { %1236 = shalt.err (!%p1233_p6)
}
  0x26   : > { %s1369_s15 = smov 64   ;;  %s1370_s16 = smov 4  }
  0x27   : > { %1118 = dma.hbm_to_vmem [thread:$0]  (!%p1470_p11), %s1737_s1, 256, %s1463_s28, [#allocation8], %s1369_s15, %s1369_s15, %s1370_s16  }
  0x28   : > { %s1237_s7 = scalar_lea.hbm %s1739_s3, 256 }
  0x29   : > { %p1238_p2 = scmp.ne.s32.totalorder %s1739_s3, %s1237_s7  ;;  %p1244_p10 = scmp.lt.u32.totalorder %s1237_s7, %s1739_s3 }
  0x2b   : > { %p1240_p1 = pnand %p1238_p2, %p1211_p13 }
  0x2d   : > { %p1241_p6 = pneg %p1240_p1 }
  0x2f   : > { %p1246_p3 = pnand %p1244_p10, %p1241_p6 }
  0x31   : > { %1249 = shalt.err (!%p1246_p3)
}
  0x32   : > { %s1250_s28 = scalar_lea.vmem %s1474_s6, 256  ;;  %p1258_p12 = scmp.lt.s32.totalorder %s1474_s6, %s1474_s6 }
  0x33   : > { %p1251_p5 = scmp.ne.s32.totalorder %s1474_s6, %s1250_s28  ;;  %p1259_p0 = scmp.lt.s32.totalorder %s1250_s28, %s1250_s28 }
  0x35   : > { %p1253_p7 = pnand %p1251_p5, %p1211_p13  ;;  %p1260_p2 = por %p1259_p0, %p1258_p12 }
  0x37   : > { %p1254_p9 = pneg %p1253_p7 }
  0x39   : > { %p1261_p1 = pnand %p1260_p2, %p1254_p9 }
  0x3b   : > { %1264 = shalt.err (!%p1261_p1)
}
  0x3c   : > { %1121 = dma.hbm_to_vmem [thread:$0]  (!%p1470_p11), %s1739_s3, 256, %s1474_s6, [#allocation8], %s1369_s15, %s1369_s15, %s1370_s16  }
  0x3d   : > { %s1529_s14 = sadd.s32 1, %s1365_s21   ;;  %s29_s29 = sadd.s32 1, %s1361_s20 }
  0x3e   : > { %s26_s17 = ssub.s32 %s1365_s21, %s1529_s14  ;;  %p36_p13 = scmp.ne.s32.totalorder %s1361_s20, %s1357_s19 }
  0x3f   : > { %p27_p6 = scmp.eq.s32.totalorder %s26_s17, 0  ;;  %p37_p10 = scmp.eq.s32.totalorder %s1365_s21, 0 }
  0x40   : > { %p1749_p3 = scmp.eq.s32.totalorder %s1440_s22, 1  ;;  %p1132_p7 = scmp.lt.s32.totalorder %s1365_s21, 2 }
  0x41   : > { %s1545_s27 = scalar_select %p27_p6, %s1361_s20, %s29_s29  }
  0x42   : > { %p1539_p5 = por %p1749_p3, %p36_p13  ;;  %p38_p9 = por %p37_p10, %p36_p13 }
  0x43   : > { %s208_s30 = sand.u32 1, %s1361_s20   ;;  %s990_s6 = sshll.u32 %s1365_s21, 7 }
  0x44   : > { %s1750_s23 = scalar_select %p1539_p5, 1, 0 }
  0x45   : > { %s989_s7 = sshll.u32 %s208_s30, 3  ;;  %s1552_s8 = scalar_lea.hbm %s1736_s0, %s990_s6 }
  0x46   : > { %s212_s9 = scalar_lea.vmem [#allocation4], %s989_s7  ;;  %p1556_p11 = pnand %p1132_p7, %p38_p9 }
  0x47   : > { %s219_s10 = sshll.u32 %s212_s9, 4  ;;  %s209_s28 = scalar_lea.sflag [#allocation5], %s208_s30  ;;  %s1554_s10 = int_to_ptr.vmem [resolvable:$true] %s219_s10 }
  0x48   : > { %s1265_s12 = scalar_lea.hbm %s1552_s8, 128  ;;  %p1267_p0 = pneg %p1556_p11 }
  0x49   : > { %p1266_p12 = scmp.ne.s32.totalorder %s1552_s8, %s1265_s12  ;;  %s1270_s17 = scalar_lea.hbm %s1736_s0, 256 }
  0x4a   : > { %p1271_p13 = scmp.lt.u32.totalorder %s1552_s8, %s1736_s0  ;;  %p1272_p6 = scmp.lt.u32.totalorder %s1270_s17, %s1265_s12 }
  0x4b   : > { %p1268_p2 = pnand %p1267_p0, %p1266_p12  ;;  %p1274_p3 = scmp.lt.u32.totalorder %s1265_s12, %s1552_s8 }
  0x4c   : > { %p1273_p10 = por %p1272_p6, %p1271_p13 }
  0x4d   : > { %p1269_p1 = pneg %p1268_p2 }
  0x4e   : > { %p1275_p7 = por %p1274_p3, %p1273_p10 }
  0x50   : > { %p1276_p9 = pnand %p1275_p7, %p1269_p1 }
  0x52   : > { %1279 = shalt.err (!%p1276_p9)
}
  0x53   : > { %s1280_s30 = scalar_lea.vmem %s1554_s10, 128  ;;  %s1371_s15 = smov [#allocation4]  }
  0x54   : > { %p1281_p12 = scmp.ne.s32.totalorder %s1554_s10, %s1280_s30  ;;  %s1285_s16 = sshll.u32 %s1371_s15, 4  ;;  %s1286_s16 = int_to_ptr.vmem [resolvable:$false] %s1285_s16 }
  0x55   : > { %s1287_s9 = scalar_lea.vmem %s1286_s16, 256  ;;  %p1288_p4 = scmp.lt.s32.totalorder %s1554_s10, %s1286_s16 }
  0x56   : > { %p1283_p2 = pnand %p1281_p12, %p1267_p0  ;;  %p1289_p13 = scmp.lt.s32.totalorder %s1287_s9, %s1280_s30 }
  0x58   : > { %p1284_p5 = pneg %p1283_p2  ;;  %p1290_p6 = por %p1289_p13, %p1288_p4 }
  0x5a   : > { %p1291_p10 = pnand %p1290_p6, %p1284_p5 }
  0x5c   : > { %1294 = shalt.err (!%p1291_p10)
}
  0x5d   : > { %1125 = dma.hbm_to_vmem [thread:$0]  (!%p1556_p11), %s1552_s8, 128, %s1554_s10, %s209_s28  }
  0x5e   : > { %228 = sbr.rel (%p1459_p8) target bundleno = 1622 (0x656), region = 40  ;;  %s1588_s12 = sand.u32 (!%p1459_p8), 1, %s1357_s19  }
  0x5f   : > { %s992_s13 = sshll.u32 (!%p1459_p8), %s1588_s12, 3  ;;  %s231_s29 = scalar_lea.sflag (!%p1459_p8), [#allocation5], %s1588_s12 }
  0x60   : > { %s234_s17 = scalar_lea.vmem (!%p1459_p8), [#allocation4], %s992_s13  ;;  %p1752_p4 = scmp.ne.s32.totalorder (!%p1459_p8), %s1745_s24, 0 }
  0x65   : > { %1340 = dma.done.wait (%p1752_p4), %s231_s29, 128  }
  0x66   : > { %1342 = vsyncadd (%p1752_p4), %s231_s29, 4294967168  ;;  %p1753_p5 = scmp.eq.s32.totalorder %s1440_s22, 0 }
  0x68   : > { %1344 = dma.done.wait (%p1753_p5), [#allocation8], 512   ;;  %p1754_p8 = pmov %p1753_p5 }
  0x69   : > { %v1372_v0 = vmov 0.0   ;;  %vm1373_vm0 = vmmov 0   ;;  %v1188_v1 = vld [vmem:[#allocation7] sm:$0xff]   ;;  %v1189_v2 = vld [vmem:[#allocation7 + $0x8] sm:$0xff]   ;;  %v1608_v3 = vld [vmem:[%s234_s17] sm:$0xff]  ;;  %vm295_vm1 = vcmask 261120  }
  0x6a   : > { %1346 = vsyncadd (%p1754_p8), [#allocation8], 4294966784  ;;  %1039 = vmatprep.subr.bf16.mxu0 %v1372_v0  ;;  %1043 = vmatprep.mubr.msk.bf16.mxu0 %vm1373_vm0, %v1372_v0  ;;  %v271_v4 = vpack.c.bf16 %v1608_v3, %v1608_v3  ;;  %v996_v5 = vld [vmem:[%s1738_s2] ss:$0 sm:$0xff]  ;;  %vm340_vm2 = vcmask 781312   ;;  %s1374_s8 = smov 120  }
  0x6b   : > { %1047 = vmatprep.subr.bf16.mxu1 %v1372_v0  ;;  %1049 = vmatprep.mubr.msk.bf16.mxu1 %vm1373_vm0, %v1372_v0  ;;  %s1375_s10 = smov 96   ;;  %s1376_s11 = smov 80   ;;  %vm348_vm3 = vcmask 64512   ;;  %vm412_vm4 = vcmask 1043456   ;;  %vm802_vm5 = vcmask 130048   ;;  %vm805_vm6 = vcmask 195584  }
  0x6c   : > { %1040 = vmatpush3.bf16.msra.mxu0 %v1188_v1  ;;  %s1377_s28 = smov 88   ;;  %s1378_s7 = smov 72   ;;  %vm809_vm7 = vcmask 257024  }
  0x6d   : > { %1041 = vmatprep.subr.bf16.mxu0 %v1372_v0  ;;  %s1379_s6 = smov 112   ;;  %s1380_s30 = smov 104  }
  0x6e   : > { %s1381_s15 = smov 56   ;;  %s1382_s16 = smov 64  }
  0x6f   : > { %s1383_s9 = smov 40   ;;  %s1384_s29 = smov 48  }
  0x70   : > { %1042 = vmatpush3.bf16.msra.mxu0 %v1189_v2  ;;  %s1385_s17 = smov 8   ;;  %s1386_s24 = smov 16  }
  0x71   : > { %1053 = vmatprep.subr.bf16.mxu0 %v1372_v0  ;;  %s1387_s26 = smov 24   ;;  %p1755_p0 = scmp.ne.s32.totalorder %s1750_s23, 0 }
  0x73   : > { %1044 = vmatmul.mubr.msk.bf16.vlgmr.msra.gmra.mrb[0].mxu0 %vm295_vm1, %v271_v4 }
  0x74   : > { %1055 = vmatprep.mubr.msk.bf16.mxu0 %vm1373_vm0, %v1372_v0 }
 0x146   : > { %v333_v6 = vpop.f32.mrb[0].mxu0 }
 0x147   : > { %v334_v7 = vadd.f32 %v996_v5, %v333_v6  ;;  %v1045_v8 = vpop.f32.mrb[1].mxu0 }
 0x148   : > { %v336_v9 = vpop.f32.mrb[2].mxu0 }
 0x149   : > { %v339_v10 = vpack.c.bf16 %v334_v7, %v334_v7  ;;  %v1046_v11 = vpop.f32.mrb[3].mxu0 }
 0x14b   : > { %341 = vst.msk [vmem:[#allocation2] sm:$0xf] %vm340_vm2, %v339_v10 }
 0x152   : > { %v342_v12 = vld [vmem:[#allocation2] sm:$0xf] }
 0x153   : > { %v1620_v13 = vcombine.low %v342_v12, %v342_v12 }
 0x155   : > { %457 = vrot.lane.b32.xlu1 %v1620_v13, %s1374_s8  ;;  %346 = vrot.lane.b32.xlu0 %v1620_v13, %s1375_s10 }
 0x159   : > { %570 = vrot.lane.b32.xlu1 %v1620_v13, %s1376_s11  ;;  %459 = vrot.lane.b32.xlu0 %v1620_v13, %s1377_s28  ;;  %s1014_s11 = sshll.u32 %s1440_s22, 7  ;;  %s268_s28 = scalar_lea.vmem [#allocation10], %s992_s13 }
 0x15a   : > { %s882_s22 = scalar_lea.sflag [#allocation6], %s1588_s12 }
 0x15d   : > { %681 = vrot.lane.b32.xlu1 %v1620_v13, %s1378_s7  ;;  %568 = vrot.lane.b32.xlu0 %v1620_v13, %s1379_s6  ;;  %s895_s7 = sshll.u32 %s268_s28, 4  ;;  %s1693_s7 = int_to_ptr.vmem [resolvable:$true] %s895_s7 }
 0x15e   : > { %s1295_s13 = scalar_lea.vmem %s1693_s7, 128 }
 0x15f   : > { %p1296_p11 = scmp.ne.s32.totalorder %s1693_s7, %s1295_s13 }
 0x161   : > { %679 = vrot.lane.b32.xlu0 %v1620_v13, %s1380_s30  ;;  %p1297_p1 = pnand %p1296_p11, %p1755_p0 }
 0x163   : > { %p1298_p3 = pneg %p1297_p1 }
 0x1c7   : > { %v347_v14 = vpop.permute.xlu0 %346  ;;  %v458_v17 = vpop.permute.xlu1 %457 }
 0x1c8   : > { %v353_v15 = vsel %vm348_vm3, %v347_v14, 0 }
 0x1c9   : > { %1048 = vmatpush3.bf16.xpose.msra.mxu1 %v353_v15 }
 0x1ca   : > { %1059 = vmatprep.subr.bf16.mxu1 %v1372_v0 }
 0x1cb   : > { %v460_v16 = vpop.permute.xlu0 %459  ;;  %v571_v19 = vpop.permute.xlu1 %570 }
 0x1cc   : > { %v465_v18 = vsel %vm348_vm3, %v460_v16, 0  ;;  %v576_v20 = vsel %vm348_vm3, %v571_v19, 0 }
 0x1cf   : > { %v682_v21 = vpop.permute.xlu1 %681  ;;  %v569_v22 = vpop.permute.xlu0 %568 }
 0x1d0   : > { %1050 = vmatmul.mubr.msk.bf16.vlgmr.msra.gmra.mrb[0].mxu1 %vm348_vm3, %v342_v12  ;;  %v687_v23 = vsel %vm348_vm3, %v682_v21, 0 }
 0x1d1   : > { %1060 = vmatpush3.bf16.xpose.msra.mxu1 %v465_v18  ;;  %1061 = vmatprep.mubr.msk.bf16.mxu1 %vm1373_vm0, %v1372_v0 }
 0x1d2   : > { %1071 = vmatprep.subr.bf16.mxu1 %v1372_v0 }
 0x1d3   : > { %v680_v24 = vpop.permute.xlu0 %679 }
 0x1d8   : > { %1062 = vmatmul.mubr.msk.bf16.vlgmr.msra.gmra.mrb[4].mxu1 %vm348_vm3, %v458_v17 }
 0x1d9   : > { %1072 = vmatpush3.bf16.xpose.msra.mxu1 %v576_v20  ;;  %1073 = vmatprep.mubr.msk.bf16.mxu1 %vm1373_vm0, %v1372_v0 }
 0x1da   : > { %1083 = vmatprep.subr.bf16.mxu1 %v1372_v0 }
 0x1e0   : > { %1074 = vmatmul.mubr.msk.bf16.vlgmr.msra.gmra.mrb[8].mxu1 %vm348_vm3, %v569_v22 }
 0x1e1   : > { %1084 = vmatpush3.bf16.xpose.msra.mxu1 %v687_v23  ;;  %1085 = vmatprep.mubr.msk.bf16.mxu1 %vm1373_vm0, %v1372_v0 }
 0x1e2   : > { %1095 = vmatprep.subr.bf16.mxu1 %v1372_v0 }
 0x1e8   : > { %1086 = vmatmul.mubr.msk.bf16.vlgmr.msra.gmra.mrb[12].mxu1 %vm348_vm3, %v680_v24 }
 0x1e9   : > { %1099 = vmatprep.mubr.msk.bf16.mxu1 %vm1373_vm0, %v1372_v0 }
 0x2a3   : > { %v389_v25 = vpop.f32.mrb[0].mxu1 }
 0x2a4   : > { %v1051_v26 = vpop.f32.mrb[1].mxu1  ;;  %v395_v27 = vsel %vm348_vm3, %v389_v25, -inf }
 0x2a5   : > { %396 = vmax.xlane.f32.xlu1 %v395_v27  ;;  %v392_v28 = vpop.f32.mrb[2].mxu1 }
 0x2a6   : > { %v1052_v29 = vpop.f32.mrb[3].mxu1 }
 0x2ab   : > { %v501_v30 = vpop.f32.mrb[4].mxu1 }
 0x2ac   : > { %v1063_v31 = vpop.f32.mrb[5].mxu1  ;;  %v507_v32 = vsel %vm348_vm3, %v501_v30, -inf }
 0x2ad   : > { %508 = vmax.xlane.f32.xlu0 %v507_v32  ;;  %v504_v33 = vpop.f32.mrb[6].mxu1 }
 0x2ae   : > { %v1064_v34 = vpop.f32.mrb[7].mxu1 }
 0x2b3   : > { %v612_v35 = vpop.f32.mrb[8].mxu1 }
 0x2b4   : > { %v1075_v36 = vpop.f32.mrb[9].mxu1  ;;  %v618_v37 = vsel %vm348_vm3, %v612_v35, -inf }
 0x2b5   : > { %619 = vmax.xlane.f32.xlu0 %v618_v37  ;;  %v615_v38 = vpop.f32.mrb[10].mxu1  ;;  %v1191_v36 = vld [vmem:[#allocation9] sm:$0xff]  }
 0x2b6   : > { %v1076_v39 = vpop.f32.mrb[11].mxu1  ;;  %1096 = vmatpush3.bf16.msra.mxu1 %v1191_v36  ;;  %v1192_v38 = vld [vmem:[#allocation9 + $0x8] sm:$0xff]  }
 0x2b7   : > { %1097 = vmatprep.subr.bf16.mxu1 %v1372_v0 }
 0x2ba   : > { %1098 = vmatpush3.bf16.msra.mxu1 %v1192_v38 }
 0x2bb   : > { %v723_v40 = vpop.f32.mrb[12].mxu1 }
 0x2bc   : > { %v1087_v41 = vpop.f32.mrb[13].mxu1  ;;  %v729_v42 = vsel %vm348_vm3, %v723_v40, -inf }
 0x2bd   : > { %730 = vmax.xlane.f32.xlu1 %v729_v42  ;;  %v726_v43 = vpop.f32.mrb[14].mxu1 }
 0x2be   : > { %v1088_v44 = vpop.f32.mrb[15].mxu1 }
 0x332   : > { %v397_v45 = vpop.xlane.xlu1 %396 }
 0x333   : > { %v398_v46 = vsub.f32 %v389_v25, %v397_v45 }
 0x335   : > { %v399_v47 = vmul.f32 1.442695, %v398_v46 }
 0x337   : > { %1193 = vpow2.f32 %v399_v47 }
 0x33a   : > { %v509_v48 = vpop.xlane.xlu0 %508 }
 0x33b   : > { %v510_v49 = vsub.f32 %v501_v30, %v509_v48 }
 0x33d   : > { %v511_v50 = vmul.f32 1.442695, %v510_v49 }
 0x33f   : > { %1195 = vpow2.f32 %v511_v50 }
 0x341   : > { %v1194_v51 = vpop.eup %1193 }
 0x342   : > { %v620_v52 = vpop.xlane.xlu0 %619  ;;  %v401_v53 = vsel %vm348_vm3, %v1194_v51, 0.0 }
 0x343   : > { %v621_v54 = vsub.f32 %v612_v35, %v620_v52  ;;  %402 = vadd.xlane.f32.xlu0 %v401_v53 }
 0x345   : > { %v622_v55 = vmul.f32 1.442695, %v621_v54 }
 0x347   : > { %1197 = vpow2.f32 %v622_v55  ;;  %v1009_v55 = vld [vmem:[%s1740_s4] ss:$0 sm:$0xff] }
 0x349   : > { %v1196_v56 = vpop.eup %1195 }
 0x34a   : > { %v513_v57 = vsel %vm348_vm3, %v1196_v56, 0.0  ;;  %v731_v60 = vpop.xlane.xlu1 %730 }
 0x34b   : > { %514 = vadd.xlane.f32.xlu1 %v513_v57  ;;  %v732_v61 = vsub.f32 %v723_v40, %v731_v60 }
 0x34d   : > { %v733_v62 = vmul.f32 1.442695, %v732_v61 }
 0x34f   : > { %1199 = vpow2.f32 %v733_v62 }
 0x351   : > { %v1198_v58 = vpop.eup %1197 }
 0x352   : > { %v624_v59 = vsel %vm348_vm3, %v1198_v58, 0.0 }
 0x353   : > { %625 = vadd.xlane.f32.xlu0 %v624_v59 }
 0x359   : > { %v1200_v63 = vpop.eup %1199 }
 0x35a   : > { %v735_v1 = vsel %vm348_vm3, %v1200_v63, 0.0 }
 0x35c   : > { %519 = vrot.lane.b32.xlu1 %v1620_v13, %s1381_s15  ;;  %s1691_s15 = scalar_lea.hbm %s1741_s5, %s1014_s11 }
 0x369   : > { %407 = vrot.lane.b32.xlu0 %v1620_v13, %s1382_s16  ;;  %s1388_s16 = smov [#allocation10]  }
 0x36d   : > { %741 = vrot.lane.b32.xlu0 %v1620_v13, %s1383_s9  ;;  %s1299_s9 = sshll.u32 %s1388_s16, 4  ;;  %s1300_s9 = int_to_ptr.vmem [resolvable:$false] %s1299_s9 }
 0x36e   : > { %p1302_p7 = scmp.lt.s32.totalorder %s1693_s7, %s1300_s9 }
 0x380   : > { %736 = vadd.xlane.f32.xlu1 %v735_v1 }
 0x391   : > { %630 = vrot.lane.b32.xlu1 %v1620_v13, %s1384_s29  ;;  %s1301_s29 = scalar_lea.vmem %s1300_s9, 256 }
 0x392   : > { %p1303_p9 = scmp.lt.s32.totalorder %s1301_s29, %s1295_s13 }
 0x394   : > { %p1304_p12 = por %p1303_p9, %p1302_p7 }
 0x396   : > { %p1305_p2 = pnand %p1304_p12, %p1298_p3 }
 0x3d0   : > { %v403_v2 = vpop.xlane.xlu0 %402 }
 0x3d1   : > { %1201 = vrcp.f32 %v403_v2 }
 0x3d8   : > { %v515_v4 = vpop.xlane.xlu1 %514 }
 0x3d9   : > { %1203 = vrcp.f32 %v515_v4 }
 0x3db   : > { %v1202_v5 = vpop.eup %1201 }
 0x3dc   : > { %v405_v7 = vmul.f32 %v1202_v5, %v1194_v51  ;;  %v520_v10 = vpop.permute.xlu1 %519 }
 0x3dd   : > { %v525_v14 = vsel %vm412_vm4, %v520_v10, 0 }
 0x3de   : > { %v406_v11 = vpack.c.bf16 %v405_v7, %v405_v7 }
 0x3e0   : > { %v626_v6 = vpop.xlane.xlu0 %625 }
 0x3e1   : > { %1205 = vrcp.f32 %v626_v6 }
 0x3e3   : > { %v1204_v12 = vpop.eup %1203 }
 0x3e4   : > { %v408_v8 = vpop.permute.xlu0 %407  ;;  %v517_v13 = vmul.f32 %v1204_v12, %v1196_v56 }
 0x3e5   : > { %v414_v9 = vsel %vm412_vm4, %v408_v8, 0 }
 0x3e6   : > { %1054 = vmatpush3.bf16.msra.mxu0 %v414_v9  ;;  %v518_v15 = vpack.c.bf16 %v517_v13, %v517_v13 }
 0x3e7   : > { %1065 = vmatprep.subr.bf16.mxu0 %v1372_v0 }
 0x3e8   : > { %v742_v21 = vpop.permute.xlu0 %741 }
 0x3e9   : > { %1056 = vmatmul.mubr.msk.bf16.vlgmr.msra.gmra.mrb[4].mxu0 %vm348_vm3, %v406_v11  ;;  %v747_v23 = vsel %vm412_vm4, %v742_v21, 0 }
 0x3ea   : > { %1066 = vmatpush3.bf16.msra.mxu0 %v525_v14  ;;  %1067 = vmatprep.mubr.msk.bf16.mxu0 %vm1373_vm0, %v1372_v0 }
 0x3eb   : > { %1077 = vmatprep.subr.bf16.mxu0 %v1372_v0  ;;  %v1206_v16 = vpop.eup %1205 }
 0x3ec   : > { %v628_v18 = vmul.f32 %v1206_v16, %v1198_v58 }
 0x3ee   : > { %v629_v22 = vpack.c.bf16 %v628_v18, %v628_v18 }
 0x3f1   : > { %1068 = vmatmul.mubr.msk.bf16.vlgmr.msra.gmra.mrb[8].mxu0 %vm348_vm3, %v518_v15 }
 0x3f2   : > { %1079 = vmatprep.mubr.msk.bf16.mxu0 %vm1373_vm0, %v1372_v0 }
 0x40d   : > { %v737_v17 = vpop.xlane.xlu1 %736 }
 0x40e   : > { %1207 = vrcp.f32 %v737_v17 }
 0x411   : > { %v631_v19 = vpop.permute.xlu1 %630 }
 0x412   : > { %v636_v20 = vsel %vm412_vm4, %v631_v19, 0 }
 0x413   : > { %1078 = vmatpush3.bf16.msra.mxu0 %v636_v20 }
 0x414   : > { %1089 = vmatprep.subr.bf16.mxu0 %v1372_v0 }
 0x416   : > { %1080 = vmatmul.mubr.msk.bf16.vlgmr.msra.gmra.mrb[12].mxu0 %vm348_vm3, %v629_v22 }
 0x417   : > { %1090 = vmatpush3.bf16.msra.mxu0 %v747_v23  ;;  %1091 = vmatprep.mubr.msk.bf16.mxu0 %vm1373_vm0, %v1372_v0 }
 0x418   : > { %v1208_v24 = vpop.eup %1207 }
 0x419   : > { %v739_v25 = vmul.f32 %v1208_v24, %v1200_v63 }
 0x41b   : > { %v740_v26 = vpack.c.bf16 %v739_v25, %v739_v25 }
 0x41e   : > { %1092 = vmatmul.mubr.msk.bf16.vlgmr.msra.gmra.mrb[16].mxu0 %vm348_vm3, %v740_v26 }
 0x4bc   : > { %v450_v27 = vpop.f32.mrb[4].mxu0 }
 0x4bd   : > { %v1057_v28 = vpop.f32.mrb[5].mxu0  ;;  %v456_v49 = vpack.c.bf16 %v450_v27, %v450_v27 }
 0x4be   : > { %v453_v29 = vpop.f32.mrb[6].mxu0 }
 0x4bf   : > { %v1058_v30 = vpop.f32.mrb[7].mxu0 }
 0x4c4   : > { %v561_v31 = vpop.f32.mrb[8].mxu0 }
 0x4c5   : > { %v567_v32 = vpack.c.bf16 %v561_v31, %v561_v31  ;;  %v1069_v33 = vpop.f32.mrb[9].mxu0 }
 0x4c6   : > { %v564_v34 = vpop.f32.mrb[10].mxu0 }
 0x4c7   : > { %791 = vrot.lane.b32.xlu1 %v567_v32, %s1385_s17  ;;  %v1070_v35 = vpop.f32.mrb[11].mxu0 }
 0x4e9   : > { %v672_v37 = vpop.f32.mrb[12].mxu0 }
 0x4ea   : > { %v678_v39 = vpack.c.bf16 %v672_v37, %v672_v37  ;;  %v1081_v40 = vpop.f32.mrb[13].mxu0 }
 0x4eb   : > { %v675_v41 = vpop.f32.mrb[14].mxu0 }
 0x4ec   : > { %794 = vrot.lane.b32.xlu0 %v678_v39, %s1386_s24  ;;  %v1082_v42 = vpop.f32.mrb[15].mxu0 }
 0x4f1   : > { %v783_v43 = vpop.f32.mrb[16].mxu0 }
 0x4f2   : > { %v789_v44 = vpack.c.bf16 %v783_v43, %v783_v43  ;;  %v1093_v45 = vpop.f32.mrb[17].mxu0 }
 0x4f3   : > { %v786_v46 = vpop.f32.mrb[18].mxu0 }
 0x4f4   : > { %797 = vrot.lane.b32.xlu1 %v789_v44, %s1387_s26  ;;  %v1094_v47 = vpop.f32.mrb[19].mxu0 }
 0x539   : > { %v792_v48 = vpop.permute.xlu1 %791 }
 0x53a   : > { %v801_v0 = vsel %vm348_vm3, %v456_v49, %v792_v48 }
 0x55e   : > { %v795_v50 = vpop.permute.xlu0 %794 }
 0x55f   : > { %v804_v51 = vsel %vm802_vm5, %v801_v0, %v795_v50 }
 0x566   : > { %v798_v52 = vpop.permute.xlu1 %797 }
 0x567   : > { %v807_v53 = vsel %vm805_vm6, %v804_v51, %v798_v52 }
 0x568   : > { %810 = vst.msk [vmem:[#allocation3] sm:$0xf] %vm809_vm7, %v807_v53 }
 0x56f   : > { %v811_v54 = vld [vmem:[#allocation3] sm:$0xf] }
 0x570   : > { %1100 = vmatmul.mubr.msk.bf16.vlgmr.msra.gmra.mrb[16].mxu1 %vm295_vm1, %v811_v54 }
 0x643   : > { %v872_v56 = vpop.f32.mrb[16].mxu1 }
 0x644   : > { %v873_v57 = vadd.f32 %v1009_v55, %v872_v56  ;;  %v1101_v58 = vpop.f32.mrb[17].mxu1 }
 0x645   : > { %v875_v59 = vpop.f32.mrb[18].mxu1 }
 0x646   : > { %v879_v60 = vadd.f32 %v873_v57, %v1608_v3  ;;  %v1102_v61 = vpop.f32.mrb[19].mxu1 }
 0x648   : > { %880 = vst.msk [vmem:[%s268_s28] sm:$0xff] %vm295_vm1, %v879_v60 }
 0x649   : > { %1308 = shalt.err (!%p1305_p2)
}
 0x64a   : > { %s1309_s12 = scalar_lea.hbm %s1691_s15, 128  ;;  %s1313_s26 = scalar_lea.hbm %s1741_s5, 256 }
 0x64b   : > { %p1310_p13 = scmp.ne.s32.totalorder %s1691_s15, %s1309_s12  ;;  %p1314_p4 = scmp.lt.u32.totalorder %s1691_s15, %s1741_s5 }
 0x64c   : > { %p1315_p5 = scmp.lt.u32.totalorder %s1313_s26, %s1309_s12  ;;  %p1317_p11 = scmp.lt.u32.totalorder %s1309_s12, %s1691_s15 }
 0x64d   : > { %p1311_p6 = pnand %p1310_p13, %p1755_p0 }
 0x64e   : > { %p1316_p8 = por %p1315_p5, %p1314_p4 }
 0x64f   : > { %p1312_p10 = pneg %p1311_p6 }
 0x650   : > { %p1318_p1 = por %p1317_p11, %p1316_p8 }
 0x652   : > { %p1319_p3 = pnand %p1318_p1, %p1312_p10 }
 0x654   : > { %1322 = shalt.err (!%p1319_p3)
}
 0x655   : > { %1113 = dma.vmem_to_hbm [thread:$0]  (%p1755_p0), %s1693_s7, 128, %s1691_s15, %s882_s22  }
 0x656 PF: > { %s907_s11 = sand.u32 1, %s1353_s18   ;;  %p1756_p7 = scmp.ne.s32.totalorder %s1746_s25, 0 }
 0x657   : > { %p1757_p9 = scmp.ge.s32.totalorder %s1365_s21, 2  ;;  %s908_s28 = scalar_lea.sflag [#allocation6], %s907_s11 }
 0x659   : > { %p1127_p12 = pnand %p1757_p9, %p1756_p7 }
 0x65b   : > { %1348 = dma.done.wait (!%p1127_p12), %s908_s28, 128  }
 0x65c   : > { %1350 = vsyncadd (!%p1127_p12), %s908_s28, 4294967168  ;;  %p19_p2 = scmp.ge.s32.totalorder %s1529_s14, 4   ;;  %s1758_s18 = smov %s1357_s19 }
 0x65d   : > { %s1759_s19 = smov %s1361_s20  ;;  %s1760_s20 = smov %s1545_s27 }
 0x65e   : > { %s1761_s21 = smov %s1529_s14  ;;  %21 = sbr.rel (!%p19_p2) target bundleno = 6 (0x6), region = 93 }
 0x665   :  { %913 = vsyncpa [#allocation5], 1 }
 0x666   :  { %915 = vsyncpa [#allocation5 + $0x1], 1 }
 0x667   :  { %916 = vsyncpa [#allocation8], 1 }
 0x668   :  { %917 = vsyncpa [#allocation6], 1 }
 0x669   :  { %919 = vsyncpa [#allocation6 + $0x1], 1 }

// kernel: tpu_custom_call.1
= control target key start
LH: loop header
LB: loop body
LE: loop exit
PB: predicated region body
PF: predicated region fallthrough
CT: control target
= control target key end

     0   :  { %10 = vsyncpa [#allocation5], 0  ;;  %s1736_s0 = inlined_call_operand.hbm [shape: f32[2,8,32], index: 0, kind: input, shape index: {}]   ;;  %s1737_s1 = inlined_call_operand.hbm [shape: bf16[32,96], index: 1, kind: input, shape index: {}]   ;;  %s1738_s2 = inlined_call_operand.vmem [shape: f32[1,96], index: 2, kind: input, shape index: {}]   ;;  %s1739_s3 = inlined_call_operand.hbm [shape: bf16[32,32], index: 3, kind: input, shape index: {}]   ;;  %s1740_s4 = inlined_call_operand.vmem [shape: f32[1,32], index: 4, kind: input, shape index: {}]   ;;  %s1741_s5 = inlined_call_operand.hbm [shape: f32[2,8,32], index: 5, kind: output, shape index: {}]  }
   0x1   :  { %12 = vsyncpa [#allocation5 + $0x1], 0 }
   0x2   :  { %13 = vsyncpa [#allocation8], 0 }
   0x3   :  { %14 = vsyncpa [#allocation6], 0 }
   0x4   :  { %16 = vsyncpa [#allocation6 + $0x1], 0  ;;  %s1419_s18 = smov 0   ;;  %s1421_s19 = smov 0  }
   0x5   :  { %s1423_s20 = smov 0   ;;  %s1425_s21 = smov 0  }
   0x6 LB: > { %s1440_s22 = sadd.s32 4294967295, %s1365_s21   ;;  %s984_s23 = sadd.s32 4294967294, %s1365_s21   ;;  %s1365_s21 = sphi %s1425_s21, %s1761_s21   ;;  %s1361_s20 = sphi %s1423_s20, %s1760_s20   ;;  %s1357_s19 = sphi %s1421_s19, %s1759_s19   ;;  %s1353_s18 = sphi %s1419_s18, %s1758_s18  }
   0x7   : > { %p42_p0 = scmp.ne.s32.totalorder %s1357_s19, %s1353_s18  ;;  %p1742_p1 = scmp.eq.s32.totalorder %s1440_s22, 0 }
   0x8   : > { %p156_p3 = scmp.eq.s32.totalorder %s984_s23, 1  ;;  %p985_p5 = scmp.ge.s32.totalorder %s1365_s21, 1 }
   0x9   : > { %p1449_p4 = por %p1742_p1, %p42_p0  ;;  %p163_p7 = scmp.lt.s32.totalorder %s1365_s21, 3 }
   0xa   : > { %p1454_p6 = por %p156_p3, %p42_p0  ;;  %s1367_s27 = smov [#allocation7]  }
   0xb   : > { %s1745_s24 = scalar_select %p1449_p4, 1, 0 }
   0xc   : > { %s1746_s25 = scalar_select %p1454_p6, 1, 0 }
   0xd   : > { %p1459_p8 = pnand %p985_p5, %p163_p7  ;;  %s175_s28 = sshll.u32 %s1367_s27, 4  ;;  %s1463_s28 = int_to_ptr.vmem [resolvable:$true] %s175_s28 }
   0xe   : > { %s1368_s30 = smov [#allocation9]   ;;  %s1209_s9 = scalar_lea.hbm %s1737_s1, 256 }
   0xf   : > { %p1115_p9 = pneg %p1459_p8  ;;  %s191_s6 = sshll.u32 %s1368_s30, 4  ;;  %s1474_s6 = int_to_ptr.vmem [resolvable:$true] %s191_s6 }
  0x10   : > { %p1210_p12 = scmp.ne.s32.totalorder %s1737_s1, %s1209_s9  ;;  %p1216_p5 = scmp.lt.u32.totalorder %s1209_s9, %s1737_s1 }
  0x11   : > { %p1470_p11 = pnand %p1115_p9, %p1742_p1 }
  0x13   : > { %p1211_p13 = pneg %p1470_p11 }
  0x15   : > { %p1212_p0 = pnand %p1211_p13, %p1210_p12 }
  0x17   : > { %p1213_p3 = pneg %p1212_p0 }
  0x19   : > { %p1218_p7 = pnand %p1216_p5, %p1213_p3 }
  0x1b   : > { %1221 = shalt.err (!%p1218_p7)
}
  0x1c   : > { %s1222_s14 = scalar_lea.vmem %s1463_s28, 256  ;;  %p1230_p2 = scmp.lt.s32.totalorder %s1463_s28, %s1463_s28 }
  0x1d   : > { %p1223_p9 = scmp.ne.s32.totalorder %s1463_s28, %s1222_s14  ;;  %p1231_p12 = scmp.lt.s32.totalorder %s1222_s14, %s1222_s14 }
  0x1f   : > { %p1225_p10 = pnand %p1223_p9, %p1211_p13  ;;  %p1232_p0 = por %p1231_p12, %p1230_p2 }
  0x21   : > { %p1226_p1 = pneg %p1225_p10 }
  0x23   : > { %p1233_p6 = pnand %p1232_p0, %p1226_p1 }
  0x25   : > { %1236 = shalt.err (!%p1233_p6)
}
  0x26   : > { %s1369_s15 = smov 64   ;;  %s1370_s16 = smov 4  }
  0x27   : > { %1118 = dma.hbm_to_vmem [thread:$0]  (!%p1470_p11), %s1737_s1, 256, %s1463_s28, [#allocation8], %s1369_s15, %s1369_s15, %s1370_s16  }
  0x28   : > { %s1237_s7 = scalar_lea.hbm %s1739_s3, 256 }
  0x29   : > { %p1238_p2 = scmp.ne.s32.totalorder %s1739_s3, %s1237_s7  ;;  %p1244_p10 = scmp.lt.u32.totalorder %s1237_s7, %s1739_s3 }
  0x2b   : > { %p1240_p1 = pnand %p1238_p2, %p1211_p13 }
  0x2d   : > { %p1241_p6 = pneg %p1240_p1 }
  0x2f   : > { %p1246_p3 = pnand %p1244_p10, %p1241_p6 }
  0x31   : > { %1249 = shalt.err (!%p1246_p3)
}
  0x32   : > { %s1250_s28 = scalar_lea.vmem %s1474_s6, 256  ;;  %p1258_p12 = scmp.lt.s32.totalorder %s1474_s6, %s1474_s6 }
  0x33   : > { %p1251_p5 = scmp.ne.s32.totalorder %s1474_s6, %s1250_s28  ;;  %p1259_p0 = scmp.lt.s32.totalorder %s1250_s28, %s1250_s28 }
  0x35   : > { %p1253_p7 = pnand %p1251_p5, %p1211_p13  ;;  %p1260_p2 = por %p1259_p0, %p1258_p12 }
  0x37   : > { %p1254_p9 = pneg %p1253_p7 }
  0x39   : > { %p1261_p1 = pnand %p1260_p2, %p1254_p9 }
  0x3b   : > { %1264 = shalt.err (!%p1261_p1)
}
  0x3c   : > { %1121 = dma.hbm_to_vmem [thread:$0]  (!%p1470_p11), %s1739_s3, 256, %s1474_s6, [#allocation8], %s1369_s15, %s1369_s15, %s1370_s16  }
  0x3d   : > { %s1529_s14 = sadd.s32 1, %s1365_s21   ;;  %s29_s29 = sadd.s32 1, %s1361_s20 }
  0x3e   : > { %s26_s17 = ssub.s32 %s1365_s21, %s1529_s14  ;;  %p36_p13 = scmp.ne.s32.totalorder %s1361_s20, %s1357_s19 }
  0x3f   : > { %p27_p6 = scmp.eq.s32.totalorder %s26_s17, 0  ;;  %p37_p10 = scmp.eq.s32.totalorder %s1365_s21, 0 }
  0x40   : > { %p1749_p3 = scmp.eq.s32.totalorder %s1440_s22, 1  ;;  %p1132_p7 = scmp.lt.s32.totalorder %s1365_s21, 2 }
  0x41   : > { %s1545_s27 = scalar_select %p27_p6, %s1361_s20, %s29_s29  }
  0x42   : > { %p1539_p5 = por %p1749_p3, %p36_p13  ;;  %p38_p9 = por %p37_p10, %p36_p13 }
  0x43   : > { %s208_s30 = sand.u32 1, %s1361_s20   ;;  %s990_s6 = sshll.u32 %s1365_s21, 7 }
  0x44   : > { %s1750_s23 = scalar_select %p1539_p5, 1, 0 }
  0x45   : > { %s989_s7 = sshll.u32 %s208_s30, 3  ;;  %s1552_s8 = scalar_lea.hbm %s1736_s0, %s990_s6 }
  0x46   : > { %s212_s9 = scalar_lea.vmem [#allocation4], %s989_s7  ;;  %p1556_p11 = pnand %p1132_p7, %p38_p9 }
  0x47   : > { %s219_s10 = sshll.u32 %s212_s9, 4  ;;  %s209_s28 = scalar_lea.sflag [#allocation5], %s208_s30  ;;  %s1554_s10 = int_to_ptr.vmem [resolvable:$true] %s219_s10 }
  0x48   : > { %s1265_s12 = scalar_lea.hbm %s1552_s8, 128  ;;  %p1267_p0 = pneg %p1556_p11 }
  0x49   : > { %p1266_p12 = scmp.ne.s32.totalorder %s1552_s8, %s1265_s12  ;;  %s1270_s17 = scalar_lea.hbm %s1736_s0, 256 }
  0x4a   : > { %p1271_p13 = scmp.lt.u32.totalorder %s1552_s8, %s1736_s0  ;;  %p1272_p6 = scmp.lt.u32.totalorder %s1270_s17, %s1265_s12 }
  0x4b   : > { %p1268_p2 = pnand %p1267_p0, %p1266_p12  ;;  %p1274_p3 = scmp.lt.u32.totalorder %s1265_s12, %s1552_s8 }
  0x4c   : > { %p1273_p10 = por %p1272_p6, %p1271_p13 }
  0x4d   : > { %p1269_p1 = pneg %p1268_p2 }
  0x4e   : > { %p1275_p7 = por %p1274_p3, %p1273_p10 }
  0x50   : > { %p1276_p9 = pnand %p1275_p7, %p1269_p1 }
  0x52   : > { %1279 = shalt.err (!%p1276_p9)
}
  0x53   : > { %s1280_s30 = scalar_lea.vmem %s1554_s10, 128  ;;  %s1371_s15 = smov [#allocation4]  }
  0x54   : > { %p1281_p12 = scmp.ne.s32.totalorder %s1554_s10, %s1280_s30  ;;  %s1285_s16 = sshll.u32 %s1371_s15, 4  ;;  %s1286_s16 = int_to_ptr.vmem [resolvable:$false] %s1285_s16 }
  0x55   : > { %s1287_s9 = scalar_lea.vmem %s1286_s16, 256  ;;  %p1288_p4 = scmp.lt.s32.totalorder %s1554_s10, %s1286_s16 }
  0x56   : > { %p1283_p2 = pnand %p1281_p12, %p1267_p0  ;;  %p1289_p13 = scmp.lt.s32.totalorder %s1287_s9, %s1280_s30 }
  0x58   : > { %p1284_p5 = pneg %p1283_p2  ;;  %p1290_p6 = por %p1289_p13, %p1288_p4 }
  0x5a   : > { %p1291_p10 = pnand %p1290_p6, %p1284_p5 }
  0x5c   : > { %1294 = shalt.err (!%p1291_p10)
}
  0x5d   : > { %1125 = dma.hbm_to_vmem [thread:$0]  (!%p1556_p11), %s1552_s8, 128, %s1554_s10, %s209_s28  }
  0x5e   : > { %228 = sbr.rel (%p1459_p8) target bundleno = 1622 (0x656), region = 40  ;;  %s1588_s12 = sand.u32 (!%p1459_p8), 1, %s1357_s19  }
  0x5f   : > { %s992_s13 = sshll.u32 (!%p1459_p8), %s1588_s12, 3  ;;  %s231_s29 = scalar_lea.sflag (!%p1459_p8), [#allocation5], %s1588_s12 }
  0x60   : > { %s234_s17 = scalar_lea.vmem (!%p1459_p8), [#allocation4], %s992_s13  ;;  %p1752_p4 = scmp.ne.s32.totalorder (!%p1459_p8), %s1745_s24, 0 }
  0x65   : > { %1340 = dma.done.wait (%p1752_p4), %s231_s29, 128  }
  0x66   : > { %1342 = vsyncadd (%p1752_p4), %s231_s29, 4294967168  ;;  %p1753_p5 = scmp.eq.s32.totalorder %s1440_s22, 0 }
  0x68   : > { %1344 = dma.done.wait (%p1753_p5), [#allocation8], 512   ;;  %p1754_p8 = pmov %p1753_p5 }
  0x69   : > { %v1372_v0 = vmov 0.0   ;;  %vm1373_vm0 = vmmov 0   ;;  %v1188_v1 = vld [vmem:[#allocation7] sm:$0xff]   ;;  %v1189_v2 = vld [vmem:[#allocation7 + $0x8] sm:$0xff]   ;;  %v1608_v3 = vld [vmem:[%s234_s17] sm:$0xff]  ;;  %vm295_vm1 = vcmask 261120  }
  0x6a   : > { %1346 = vsyncadd (%p1754_p8), [#allocation8], 4294966784  ;;  %1039 = vmatprep.subr.bf16.mxu0 %v1372_v0  ;;  %1043 = vmatprep.mubr.msk.bf16.mxu0 %vm1373_vm0, %v1372_v0  ;;  %v271_v4 = vpack.c.bf16 %v1608_v3, %v1608_v3  ;;  %v996_v5 = vld [vmem:[%s1738_s2] ss:$0 sm:$0xff]  ;;  %vm340_vm2 = vcmask 781312   ;;  %s1374_s8 = smov 120  }
  0x6b   : > { %1047 = vmatprep.subr.bf16.mxu1 %v1372_v0  ;;  %1049 = vmatprep.mubr.msk.bf16.mxu1 %vm1373_vm0, %v1372_v0  ;;  %s1375_s10 = smov 96   ;;  %s1376_s11 = smov 80   ;;  %vm348_vm3 = vcmask 64512   ;;  %vm412_vm4 = vcmask 1043456   ;;  %vm802_vm5 = vcmask 130048   ;;  %vm805_vm6 = vcmask 195584  }
  0x6c   : > { %1040 = vmatpush3.bf16.msra.mxu0 %v1188_v1  ;;  %s1377_s28 = smov 88   ;;  %s1378_s7 = smov 72   ;;  %vm809_vm7 = vcmask 257024  }
  0x6d   : > { %1041 = vmatprep.subr.bf16.mxu0 %v1372_v0  ;;  %s1379_s6 = smov 112   ;;  %s1380_s30 = smov 104  }
  0x6e   : > { %s1381_s15 = smov 56   ;;  %s1382_s16 = smov 64  }
  0x6f   : > { %s1383_s9 = smov 40   ;;  %s1384_s29 = smov 48  }
  0x70   : > { %1042 = vmatpush3.bf16.msra.mxu0 %v1189_v2  ;;  %s1385_s17 = smov 8   ;;  %s1386_s24 = smov 16  }
  0x71   : > { %1053 = vmatprep.subr.bf16.mxu0 %v1372_v0  ;;  %s1387_s26 = smov 24   ;;  %p1755_p0 = scmp.ne.s32.totalorder %s1750_s23, 0 }
  0x73   : > { %1044 = vmatmul.mubr.msk.bf16.vlgmr.msra.gmra.mrb[0].mxu0 %vm295_vm1, %v271_v4 }
  0x74   : > { %1055 = vmatprep.mubr.msk.bf16.mxu0 %vm1373_vm0, %v1372_v0 }
 0x146   : > { %v333_v6 = vpop.f32.mrb[0].mxu0 }
 0x147   : > { %v334_v7 = vadd.f32 %v996_v5, %v333_v6  ;;  %v1045_v8 = vpop.f32.mrb[1].mxu0 }
 0x148   : > { %v336_v9 = vpop.f32.mrb[2].mxu0 }
 0x149   : > { %v339_v10 = vpack.c.bf16 %v334_v7, %v334_v7  ;;  %v1046_v11 = vpop.f32.mrb[3].mxu0 }
 0x14b   : > { %341 = vst.msk [vmem:[#allocation2] sm:$0xf] %vm340_vm2, %v339_v10 }
 0x152   : > { %v342_v12 = vld [vmem:[#allocation2] sm:$0xf] }
 0x153   : > { %v1620_v13 = vcombine.low %v342_v12, %v342_v12 }
 0x155   : > { %457 = vrot.lane.b32.xlu1 %v1620_v13, %s1374_s8  ;;  %346 = vrot.lane.b32.xlu0 %v1620_v13, %s1375_s10 }
 0x159   : > { %570 = vrot.lane.b32.xlu1 %v1620_v13, %s1376_s11  ;;  %459 = vrot.lane.b32.xlu0 %v1620_v13, %s1377_s28  ;;  %s1014_s11 = sshll.u32 %s1440_s22, 7  ;;  %s268_s28 = scalar_lea.vmem [#allocation10], %s992_s13 }
 0x15a   : > { %s882_s22 = scalar_lea.sflag [#allocation6], %s1588_s12 }
 0x15d   : > { %681 = vrot.lane.b32.xlu1 %v1620_v13, %s1378_s7  ;;  %568 = vrot.lane.b32.xlu0 %v1620_v13, %s1379_s6  ;;  %s895_s7 = sshll.u32 %s268_s28, 4  ;;  %s1693_s7 = int_to_ptr.vmem [resolvable:$true] %s895_s7 }
 0x15e   : > { %s1295_s13 = scalar_lea.vmem %s1693_s7, 128 }
 0x15f   : > { %p1296_p11 = scmp.ne.s32.totalorder %s1693_s7, %s1295_s13 }
 0x161   : > { %679 = vrot.lane.b32.xlu0 %v1620_v13, %s1380_s30  ;;  %p1297_p1 = pnand %p1296_p11, %p1755_p0 }
 0x163   : > { %p1298_p3 = pneg %p1297_p1 }
 0x1c7   : > { %v347_v14 = vpop.permute.xlu0 %346  ;;  %v458_v17 = vpop.permute.xlu1 %457 }
 0x1c8   : > { %v353_v15 = vsel %vm348_vm3, %v347_v14, 0 }
 0x1c9   : > { %1048 = vmatpush3.bf16.xpose.msra.mxu1 %v353_v15 }
 0x1ca   : > { %1059 = vmatprep.subr.bf16.mxu1 %v1372_v0 }
 0x1cb   : > { %v460_v16 = vpop.permute.xlu0 %459  ;;  %v571_v19 = vpop.permute.xlu1 %570 }
 0x1cc   : > { %v465_v18 = vsel %vm348_vm3, %v460_v16, 0  ;;  %v576_v20 = vsel %vm348_vm3, %v571_v19, 0 }
 0x1cf   : > { %v682_v21 = vpop.permute.xlu1 %681  ;;  %v569_v22 = vpop.permute.xlu0 %568 }
 0x1d0   : > { %1050 = vmatmul.mubr.msk.bf16.vlgmr.msra.gmra.mrb[0].mxu1 %vm348_vm3, %v342_v12  ;;  %v687_v23 = vsel %vm348_vm3, %v682_v21, 0 }
 0x1d1   : > { %1060 = vmatpush3.bf16.xpose.msra.mxu1 %v465_v18  ;;  %1061 = vmatprep.mubr.msk.bf16.mxu1 %vm1373_vm0, %v1372_v0 }
 0x1d2   : > { %1071 = vmatprep.subr.bf16.mxu1 %v1372_v0 }
 0x1d3   : > { %v680_v24 = vpop.permute.xlu0 %679 }
 0x1d8   : > { %1062 = vmatmul.mubr.msk.bf16.vlgmr.msra.gmra.mrb[4].mxu1 %vm348_vm3, %v458_v17 }
 0x1d9   : > { %1072 = vmatpush3.bf16.xpose.msra.mxu1 %v576_v20  ;;  %1073 = vmatprep.mubr.msk.bf16.mxu1 %vm1373_vm0, %v1372_v0 }
 0x1da   : > { %1083 = vmatprep.subr.bf16.mxu1 %v1372_v0 }
 0x1e0   : > { %1074 = vmatmul.mubr.msk.bf16.vlgmr.msra.gmra.mrb[8].mxu1 %vm348_vm3, %v569_v22 }
 0x1e1   : > { %1084 = vmatpush3.bf16.xpose.msra.mxu1 %v687_v23  ;;  %1085 = vmatprep.mubr.msk.bf16.mxu1 %vm1373_vm0, %v1372_v0 }
 0x1e2   : > { %1095 = vmatprep.subr.bf16.mxu1 %v1372_v0 }
 0x1e8   : > { %1086 = vmatmul.mubr.msk.bf16.vlgmr.msra.gmra.mrb[12].mxu1 %vm348_vm3, %v680_v24 }
 0x1e9   : > { %1099 = vmatprep.mubr.msk.bf16.mxu1 %vm1373_vm0, %v1372_v0 }
 0x2a3   : > { %v389_v25 = vpop.f32.mrb[0].mxu1 }
 0x2a4   : > { %v1051_v26 = vpop.f32.mrb[1].mxu1  ;;  %v395_v27 = vsel %vm348_vm3, %v389_v25, -inf }
 0x2a5   : > { %396 = vmax.xlane.f32.xlu1 %v395_v27  ;;  %v392_v28 = vpop.f32.mrb[2].mxu1 }
 0x2a6   : > { %v1052_v29 = vpop.f32.mrb[3].mxu1 }
 0x2ab   : > { %v501_v30 = vpop.f32.mrb[4].mxu1 }
 0x2ac   : > { %v1063_v31 = vpop.f32.mrb[5].mxu1  ;;  %v507_v32 = vsel %vm348_vm3, %v501_v30, -inf }
 0x2ad   : > { %508 = vmax.xlane.f32.xlu0 %v507_v32  ;;  %v504_v33 = vpop.f32.mrb[6].mxu1 }
 0x2ae   : > { %v1064_v34 = vpop.f32.mrb[7].mxu1 }
 0x2b3   : > { %v612_v35 = vpop.f32.mrb[8].mxu1 }
 0x2b4   : > { %v1075_v36 = vpop.f32.mrb[9].mxu1  ;;  %v618_v37 = vsel %vm348_vm3, %v612_v35, -inf }
 0x2b5   : > { %619 = vmax.xlane.f32.xlu0 %v618_v37  ;;  %v615_v38 = vpop.f32.mrb[10].mxu1  ;;  %v1191_v36 = vld [vmem:[#allocation9] sm:$0xff]  }
 0x2b6   : > { %v1076_v39 = vpop.f32.mrb[11].mxu1  ;;  %1096 = vmatpush3.bf16.msra.mxu1 %v1191_v36  ;;  %v1192_v38 = vld [vmem:[#allocation9 + $0x8] sm:$0xff]  }
 0x2b7   : > { %1097 = vmatprep.subr.bf16.mxu1 %v1372_v0 }
 0x2ba   : > { %1098 = vmatpush3.bf16.msra.mxu1 %v1192_v38 }
 0x2bb   : > { %v723_v40 = vpop.f32.mrb[12].mxu1 }
 0x2bc   : > { %v1087_v41 = vpop.f32.mrb[13].mxu1  ;;  %v729_v42 = vsel %vm348_vm3, %v723_v40, -inf }
 0x2bd   : > { %730 = vmax.xlane.f32.xlu1 %v729_v42  ;;  %v726_v43 = vpop.f32.mrb[14].mxu1 }
 0x2be   : > { %v1088_v44 = vpop.f32.mrb[15].mxu1 }
 0x332   : > { %v397_v45 = vpop.xlane.xlu1 %396 }
 0x333   : > { %v398_v46 = vsub.f32 %v389_v25, %v397_v45 }
 0x335   : > { %v399_v47 = vmul.f32 1.442695, %v398_v46 }
 0x337   : > { %1193 = vpow2.f32 %v399_v47 }
 0x33a   : > { %v509_v48 = vpop.xlane.xlu0 %508 }
 0x33b   : > { %v510_v49 = vsub.f32 %v501_v30, %v509_v48 }
 0x33d   : > { %v511_v50 = vmul.f32 1.442695, %v510_v49 }
 0x33f   : > { %1195 = vpow2.f32 %v511_v50 }
 0x341   : > { %v1194_v51 = vpop.eup %1193 }
 0x342   : > { %v620_v52 = vpop.xlane.xlu0 %619  ;;  %v401_v53 = vsel %vm348_vm3, %v1194_v51, 0.0 }
 0x343   : > { %v621_v54 = vsub.f32 %v612_v35, %v620_v52  ;;  %402 = vadd.xlane.f32.xlu0 %v401_v53 }
 0x345   : > { %v622_v55 = vmul.f32 1.442695, %v621_v54 }
 0x347   : > { %1197 = vpow2.f32 %v622_v55  ;;  %v1009_v55 = vld [vmem:[%s1740_s4] ss:$0 sm:$0xff] }
 0x349   : > { %v1196_v56 = vpop.eup %1195 }
 0x34a   : > { %v513_v57 = vsel %vm348_vm3, %v1196_v56, 0.0  ;;  %v731_v60 = vpop.xlane.xlu1 %730 }
 0x34b   : > { %514 = vadd.xlane.f32.xlu1 %v513_v57  ;;  %v732_v61 = vsub.f32 %v723_v40, %v731_v60 }
 0x34d   : > { %v733_v62 = vmul.f32 1.442695, %v732_v61 }
 0x34f   : > { %1199 = vpow2.f32 %v733_v62 }
 0x351   : > { %v1198_v58 = vpop.eup %1197 }
 0x352   : > { %v624_v59 = vsel %vm348_vm3, %v1198_v58, 0.0 }
 0x353   : > { %625 = vadd.xlane.f32.xlu0 %v624_v59 }
 0x359   : > { %v1200_v63 = vpop.eup %1199 }
 0x35a   : > { %v735_v1 = vsel %vm348_vm3, %v1200_v63, 0.0 }
 0x35c   : > { %519 = vrot.lane.b32.xlu1 %v1620_v13, %s1381_s15  ;;  %s1691_s15 = scalar_lea.hbm %s1741_s5, %s1014_s11 }
 0x369   : > { %407 = vrot.lane.b32.xlu0 %v1620_v13, %s1382_s16  ;;  %s1388_s16 = smov [#allocation10]  }
 0x36d   : > { %741 = vrot.lane.b32.xlu0 %v1620_v13, %s1383_s9  ;;  %s1299_s9 = sshll.u32 %s1388_s16, 4  ;;  %s1300_s9 = int_to_ptr.vmem [resolvable:$false] %s1299_s9 }
 0x36e   : > { %p1302_p7 = scmp.lt.s32.totalorder %s1693_s7, %s1300_s9 }
 0x380   : > { %736 = vadd.xlane.f32.xlu1 %v735_v1 }
 0x391   : > { %630 = vrot.lane.b32.xlu1 %v1620_v13, %s1384_s29  ;;  %s1301_s29 = scalar_lea.vmem %s1300_s9, 256 }
 0x392   : > { %p1303_p9 = scmp.lt.s32.totalorder %s1301_s29, %s1295_s13 }
 0x394   : > { %p1304_p12 = por %p1303_p9, %p1302_p7 }
 0x396   : > { %p1305_p2 = pnand %p1304_p12, %p1298_p3 }
 0x3d0   : > { %v403_v2 = vpop.xlane.xlu0 %402 }
 0x3d1   : > { %1201 = vrcp.f32 %v403_v2 }
 0x3d8   : > { %v515_v4 = vpop.xlane.xlu1 %514 }
 0x3d9   : > { %1203 = vrcp.f32 %v515_v4 }
 0x3db   : > { %v1202_v5 = vpop.eup %1201 }
 0x3dc   : > { %v405_v7 = vmul.f32 %v1202_v5, %v1194_v51  ;;  %v520_v10 = vpop.permute.xlu1 %519 }
 0x3dd   : > { %v525_v14 = vsel %vm412_vm4, %v520_v10, 0 }
 0x3de   : > { %v406_v11 = vpack.c.bf16 %v405_v7, %v405_v7 }
 0x3e0   : > { %v626_v6 = vpop.xlane.xlu0 %625 }
 0x3e1   : > { %1205 = vrcp.f32 %v626_v6 }
 0x3e3   : > { %v1204_v12 = vpop.eup %1203 }
 0x3e4   : > { %v408_v8 = vpop.permute.xlu0 %407  ;;  %v517_v13 = vmul.f32 %v1204_v12, %v1196_v56 }
 0x3e5   : > { %v414_v9 = vsel %vm412_vm4, %v408_v8, 0 }
 0x3e6   : > { %1054 = vmatpush3.bf16.msra.mxu0 %v414_v9  ;;  %v518_v15 = vpack.c.bf16 %v517_v13, %v517_v13 }
 0x3e7   : > { %1065 = vmatprep.subr.bf16.mxu0 %v1372_v0 }
 0x3e8   : > { %v742_v21 = vpop.permute.xlu0 %741 }
 0x3e9   : > { %1056 = vmatmul.mubr.msk.bf16.vlgmr.msra.gmra.mrb[4].mxu0 %vm348_vm3, %v406_v11  ;;  %v747_v23 = vsel %vm412_vm4, %v742_v21, 0 }
 0x3ea   : > { %1066 = vmatpush3.bf16.msra.mxu0 %v525_v14  ;;  %1067 = vmatprep.mubr.msk.bf16.mxu0 %vm1373_vm0, %v1372_v0 }
 0x3eb   : > { %1077 = vmatprep.subr.bf16.mxu0 %v1372_v0  ;;  %v1206_v16 = vpop.eup %1205 }
 0x3ec   : > { %v628_v18 = vmul.f32 %v1206_v16, %v1198_v58 }
 0x3ee   : > { %v629_v22 = vpack.c.bf16 %v628_v18, %v628_v18 }
 0x3f1   : > { %1068 = vmatmul.mubr.msk.bf16.vlgmr.msra.gmra.mrb[8].mxu0 %vm348_vm3, %v518_v15 }
 0x3f2   : > { %1079 = vmatprep.mubr.msk.bf16.mxu0 %vm1373_vm0, %v1372_v0 }
 0x40d   : > { %v737_v17 = vpop.xlane.xlu1 %736 }
 0x40e   : > { %1207 = vrcp.f32 %v737_v17 }
 0x411   : > { %v631_v19 = vpop.permute.xlu1 %630 }
 0x412   : > { %v636_v20 = vsel %vm412_vm4, %v631_v19, 0 }
 0x413   : > { %1078 = vmatpush3.bf16.msra.mxu0 %v636_v20 }
 0x414   : > { %1089 = vmatprep.subr.bf16.mxu0 %v1372_v0 }
 0x416   : > { %1080 = vmatmul.mubr.msk.bf16.vlgmr.msra.gmra.mrb[12].mxu0 %vm348_vm3, %v629_v22 }
 0x417   : > { %1090 = vmatpush3.bf16.msra.mxu0 %v747_v23  ;;  %1091 = vmatprep.mubr.msk.bf16.mxu0 %vm1373_vm0, %v1372_v0 }
 0x418   : > { %v1208_v24 = vpop.eup %1207 }
 0x419   : > { %v739_v25 = vmul.f32 %v1208_v24, %v1200_v63 }
 0x41b   : > { %v740_v26 = vpack.c.bf16 %v739_v25, %v739_v25 }
 0x41e   : > { %1092 = vmatmul.mubr.msk.bf16.vlgmr.msra.gmra.mrb[16].mxu0 %vm348_vm3, %v740_v26 }
 0x4bc   : > { %v450_v27 = vpop.f32.mrb[4].mxu0 }
 0x4bd   : > { %v1057_v28 = vpop.f32.mrb[5].mxu0  ;;  %v456_v49 = vpack.c.bf16 %v450_v27, %v450_v27 }
 0x4be   : > { %v453_v29 = vpop.f32.mrb[6].mxu0 }
 0x4bf   : > { %v1058_v30 = vpop.f32.mrb[7].mxu0 }
 0x4c4   : > { %v561_v31 = vpop.f32.mrb[8].mxu0 }
 0x4c5   : > { %v567_v32 = vpack.c.bf16 %v561_v31, %v561_v31  ;;  %v1069_v33 = vpop.f32.mrb[9].mxu0 }
 0x4c6   : > { %v564_v34 = vpop.f32.mrb[10].mxu0 }
 0x4c7   : > { %791 = vrot.lane.b32.xlu1 %v567_v32, %s1385_s17  ;;  %v1070_v35 = vpop.f32.mrb[11].mxu0 }
 0x4e9   : > { %v672_v37 = vpop.f32.mrb[12].mxu0 }
 0x4ea   : > { %v678_v39 = vpack.c.bf16 %v672_v37, %v672_v37  ;;  %v1081_v40 = vpop.f32.mrb[13].mxu0 }
 0x4eb   : > { %v675_v41 = vpop.f32.mrb[14].mxu0 }
 0x4ec   : > { %794 = vrot.lane.b32.xlu0 %v678_v39, %s1386_s24  ;;  %v1082_v42 = vpop.f32.mrb[15].mxu0 }
 0x4f1   : > { %v783_v43 = vpop.f32.mrb[16].mxu0 }
 0x4f2   : > { %v789_v44 = vpack.c.bf16 %v783_v43, %v783_v43  ;;  %v1093_v45 = vpop.f32.mrb[17].mxu0 }
 0x4f3   : > { %v786_v46 = vpop.f32.mrb[18].mxu0 }
 0x4f4   : > { %797 = vrot.lane.b32.xlu1 %v789_v44, %s1387_s26  ;;  %v1094_v47 = vpop.f32.mrb[19].mxu0 }
 0x539   : > { %v792_v48 = vpop.permute.xlu1 %791 }
 0x53a   : > { %v801_v0 = vsel %vm348_vm3, %v456_v49, %v792_v48 }
 0x55e   : > { %v795_v50 = vpop.permute.xlu0 %794 }
 0x55f   : > { %v804_v51 = vsel %vm802_vm5, %v801_v0, %v795_v50 }
 0x566   : > { %v798_v52 = vpop.permute.xlu1 %797 }
 0x567   : > { %v807_v53 = vsel %vm805_vm6, %v804_v51, %v798_v52 }
 0x568   : > { %810 = vst.msk [vmem:[#allocation3] sm:$0xf] %vm809_vm7, %v807_v53 }
 0x56f   : > { %v811_v54 = vld [vmem:[#allocation3] sm:$0xf] }
 0x570   : > { %1100 = vmatmul.mubr.msk.bf16.vlgmr.msra.gmra.mrb[16].mxu1 %vm295_vm1, %v811_v54 }
 0x643   : > { %v872_v56 = vpop.f32.mrb[16].mxu1 }
 0x644   : > { %v873_v57 = vadd.f32 %v1009_v55, %v872_v56  ;;  %v1101_v58 = vpop.f32.mrb[17].mxu1 }
 0x645   : > { %v875_v59 = vpop.f32.mrb[18].mxu1 }
 0x646   : > { %v879_v60 = vadd.f32 %v873_v57, %v1608_v3  ;;  %v1102_v61 = vpop.f32.mrb[19].mxu1 }
 0x648   : > { %880 = vst.msk [vmem:[%s268_s28] sm:$0xff] %vm295_vm1, %v879_v60 }
 0x649   : > { %1308 = shalt.err (!%p1305_p2)
}
 0x64a   : > { %s1309_s12 = scalar_lea.hbm %s1691_s15, 128  ;;  %s1313_s26 = scalar_lea.hbm %s1741_s5, 256 }
 0x64b   : > { %p1310_p13 = scmp.ne.s32.totalorder %s1691_s15, %s1309_s12  ;;  %p1314_p4 = scmp.lt.u32.totalorder %s1691_s15, %s1741_s5 }
 0x64c   : > { %p1315_p5 = scmp.lt.u32.totalorder %s1313_s26, %s1309_s12  ;;  %p1317_p11 = scmp.lt.u32.totalorder %s1309_s12, %s1691_s15 }
 0x64d   : > { %p1311_p6 = pnand %p1310_p13, %p1755_p0 }
 0x64e   : > { %p1316_p8 = por %p1315_p5, %p1314_p4 }
 0x64f   : > { %p1312_p10 = pneg %p1311_p6 }
 0x650   : > { %p1318_p1 = por %p1317_p11, %p1316_p8 }
 0x652   : > { %p1319_p3 = pnand %p1318_p1, %p1312_p10 }
 0x654   : > { %1322 = shalt.err (!%p1319_p3)
}
 0x655   : > { %1113 = dma.vmem_to_hbm [thread:$0]  (%p1755_p0), %s1693_s7, 128, %s1691_s15, %s882_s22  }
 0x656 PF: > { %s907_s11 = sand.u32 1, %s1353_s18   ;;  %p1756_p7 = scmp.ne.s32.totalorder %s1746_s25, 0 }
 0x657   : > { %p1757_p9 = scmp.ge.s32.totalorder %s1365_s21, 2  ;;  %s908_s28 = scalar_lea.sflag [#allocation6], %s907_s11 }
 0x659   : > { %p1127_p12 = pnand %p1757_p9, %p1756_p7 }
 0x65b   : > { %1348 = dma.done.wait (!%p1127_p12), %s908_s28, 128  }
 0x65c   : > { %1350 = vsyncadd (!%p1127_p12), %s908_s28, 4294967168  ;;  %p19_p2 = scmp.ge.s32.totalorder %s1529_s14, 4   ;;  %s1758_s18 = smov %s1357_s19 }
 0x65d   : > { %s1759_s19 = smov %s1361_s20  ;;  %s1760_s20 = smov %s1545_s27 }
 0x65e   : > { %s1761_s21 = smov %s1529_s14  ;;  %21 = sbr.rel (!%p19_p2) target bundleno = 6 (0x6), region = 93 }
 0x665   :  { %913 = vsyncpa [#allocation5], 1 }
 0x666   :  { %915 = vsyncpa [#allocation5 + $0x1], 1 }
 0x667   :  { %916 = vsyncpa [#allocation8], 1 }
 0x668   :  { %917 = vsyncpa [#allocation6], 1 }
 0x669   :  { %919 = vsyncpa [#allocation6 + $0x1], 1 }

</bundles_post_ra>
